<compile_context>
chip_gen: v5e
topology: v5e:2x2
jax: 0.10.0
libtpu: 0.0.40
codegen_flags: <defaults>
</compile_context>

<pallas_src>
import functools
import math

import jax
import jax.numpy as jnp
from jax.experimental import pallas as pl
from jax.experimental.pallas import tpu as pltpu


# ----------------------------------------------------------------------------
# small in-kernel math helpers
# ----------------------------------------------------------------------------
def _layernorm(x, g, b, eps=1e-5):
    mu = jnp.mean(x, axis=-1, keepdims=True)
    var = jnp.mean((x - mu) ** 2, axis=-1, keepdims=True)
    return (x - mu) * jax.lax.rsqrt(var + eps) * g + b


def _erf(x):
    # Abramowitz & Stegun 7.1.26 rational approximation (|err| < 1.5e-7),
    # built only from exp / mul / add so it always lowers on Mosaic.
    a1, a2, a3, a4, a5 = 0.254829592, -0.284496736, 1.421413741, -1.453152027, 1.061405429
    p = 0.3275911
    sgn = jnp.where(x >= 0.0, 1.0, -1.0)
    ax = jnp.abs(x)
    t = 1.0 / (1.0 + p * ax)
    poly = ((((a5 * t + a4) * t + a3) * t + a2) * t + a1) * t
    return sgn * (1.0 - poly * jnp.exp(-ax * ax))


def _gelu_exact(x):
    # torch nn.GELU() default is the exact (erf) formulation.
    return 0.5 * x * (1.0 + _erf(x * (1.0 / math.sqrt(2.0))))


def _const_spec(shape):
    nd = len(shape)
    return pl.BlockSpec(shape, lambda b, _nd=nd: (0,) * _nd)


# ----------------------------------------------------------------------------
# the single fused forward kernel (one grid step == one batch element)
# ----------------------------------------------------------------------------
def _fused_kernel(*refs, depth, heads, window_size, kernel_size, conv_pool,
                  patch_size, num_patch, p_split, pool_mode):
    x_ref, cw_ref, cb_ref, wpe_ref, bpe_ref, cls_ref, pos_ref = refs[:7]
    n_layer_refs = 13 * depth
    layer_refs = refs[7:7 + n_layer_refs]
    lnfg_ref, lnfb_ref, wh_ref, bh_ref, o_ref = refs[7 + n_layer_refs:]

    W = window_size
    xp = x_ref[0].astype(jnp.float32)          # (W + 2*pad, C), zero-padded host-side

    # ---- conv front-end (BatchNorm already folded into weights/bias) -------
    # BN scale lives in cw, BN shift lives in the edge-aware bias cb.
    acc = cb_ref[...]                          # (W, C_out)
    for k in range(kernel_size):
        acc = acc + jnp.dot(xp[k:k + W, :], cw_ref[k],
                            preferred_element_type=jnp.float32)
    acc = jnp.maximum(acc, 0.0)                # ReLU

    # MaxPool1d(conv_pool): tiny unrolled sublane reduces, stays in VMEM.
    rows = [jnp.max(acc[j * conv_pool:(j + 1) * conv_pool, :], axis=0,
                    keepdims=True)
            for j in range(W // conv_pool)]
    pooled = jnp.concatenate(rows, axis=0)     # (W//conv_pool, C_out)

    # torch: conv out (NCW) .reshape(B, num_patch, patch_size)
    patches = pooled.T                         # (C_out, W//conv_pool)
    if p_split != 1:
        patches = patches.reshape(num_patch, patch_size)

    # ---- patch embedding + cls token + positional embedding ----------------
    emb = jnp.dot(patches, wpe_ref[...],
                  preferred_element_type=jnp.float32) + bpe_ref[...]
    seq = jnp.concatenate([cls_ref[...], emb], axis=0) + pos_ref[...]  # (N, D)
    N, D = seq.shape
    # emb_dropout: identity in eval mode

    # ---- transformer (all layers in-kernel; sequence stays resident) -------
    for d in range(depth):
        (ln1g, ln1b, wq, wk, wv, wo, bo,
         ln2g, ln2b, w1, b1, w2, b2) = layer_refs[13 * d:13 * (d + 1)]

        # -- multi-head self-attention (batched over heads, no lane slices) --
        xn = _layernorm(seq, ln1g[...], ln1b[...])
        xh = jnp.broadcast_to(xn[None, :, :], (heads, N, D))        # (h,N,D)
        q = jnp.einsum('hnd,hde->hne', xh, wq[...],                 # scale folded in wq
                       preferred_element_type=jnp.float32)          # (h,N,dh)
        k_ = jnp.einsum('hnd,hde->hne', xh, wk[...],
                        preferred_element_type=jnp.float32)
        v_ = jnp.einsum('hnd,hde->hne', xh, wv[...],
                        preferred_element_type=jnp.float32)

        dots = jnp.einsum('hnd,hmd->hnm', q, k_,
                          preferred_element_type=jnp.float32)       # (h,N,N)
        dots = dots - jnp.max(dots, axis=-1, keepdims=True)
        e = jnp.exp(dots)
        attn = e * pl.reciprocal(jnp.sum(e, axis=-1, keepdims=True),
                                 approx=True)
        oh = jnp.einsum('hnm,hmd->hnd', attn, v_,
                        preferred_element_type=jnp.float32)         # (h,N,dh)
        # concat-over-heads @ W_o  ==  sum_h (oh[h] @ W_o[h rows])
        proj = jnp.einsum('hnd,hde->hne', oh, wo[...],
                          preferred_element_type=jnp.float32)       # (h,N,D)
        seq = seq + jnp.sum(proj, axis=0) + bo[...]                 # residual

        # -- feed-forward -----------------------------------------------------
        xn = _layernorm(seq, ln2g[...], ln2b[...])
        h1 = jnp.dot(xn, w1[...],
                     preferred_element_type=jnp.float32) + b1[...]
        h1 = _gelu_exact(h1)
        h2 = jnp.dot(h1, w2[...],
                     preferred_element_type=jnp.float32) + b2[...]
        seq = seq + h2                                              # residual

    # ---- final LayerNorm + token select / mean + mlp_head ------------------
    if pool_mode == "mean":
        tok = jnp.mean(_layernorm(seq, lnfg_ref[...], lnfb_ref[...]),
                       axis=0, keepdims=True)
    else:   # 'cls': final LN is per-token, so it commutes with the selection
        tok = _layernorm(seq[0:1, :], lnfg_ref[...], lnfb_ref[...])
    logits = jnp.dot(tok, wh_ref[...],
                     preferred_element_type=jnp.float32) + bh_ref[...]
    o_ref[0] = logits.astype(o_ref.dtype)


def vit_tnet_forward(x, kp, *, heads, P=1, conv_pool=4, pool="cls"):
    """x: (B, window_size, num_channel); kp: kernel-layout params."""
    B, W, C = x.shape
    kernel_size = kp["conv_w"].shape[0]
    c_out = kp["conv_w"].shape[2]
    num_patch = c_out * P
    patch_size = (W // conv_pool) // P
    depth = len(kp["layers"])
    num_class = kp["head_w"].shape[1]
    pad = kernel_size // 2

    # 'same' zero padding of the raw input (BN shift contribution handled by
    # the edge-aware bias prepared on the host).
    x_pad = jnp.pad(x, ((0, 0), (pad, pad), (0, 0)))

    inputs = [x_pad, kp["conv_w"], kp["conv_b"], kp["w_pe"], kp["b_pe"],
              kp["cls"], kp["pos"]]
    for lw in kp["layers"]:
        inputs.extend(lw)
    inputs.extend([kp["lnf_g"], kp["lnf_b"], kp["head_w"], kp["head_b"]])

    in_specs = [pl.BlockSpec((1, W + 2 * pad, C), lambda b: (b, 0, 0))]
    in_specs += [_const_spec(a.shape) for a in inputs[1:]]

    kern = functools.partial(
        _fused_kernel, depth=depth, heads=heads, window_size=W,
        kernel_size=kernel_size, conv_pool=conv_pool,
        patch_size=patch_size, num_patch=num_patch, p_split=P,
        pool_mode=pool)
    out = pl.pallas_call(
        kern,
        out_shape=jax.ShapeDtypeStruct((B, 1, num_class), x.dtype),
        grid=(B,),
        in_specs=in_specs,
        out_specs=pl.BlockSpec((1, 1, num_class), lambda b: (b, 0, 0)),
        compiler_params=pltpu.CompilerParams(
            dimension_semantics=("parallel",)),
    )(*inputs)
    return out[:, 0, :]


# ----------------------------------------------------------------------------
# host-side parameter handling
# ----------------------------------------------------------------------------
def init_torch_params(key, *, window_size, num_channel, F, P, dim, depth, heads,
                      mlp_dim, num_class, kernel_size=9):
    """Deterministic synthetic params in PyTorch layout (Linear: (out, in))."""
    C = num_channel
    c_out = C * F
    dh = dim // heads
    inner = dh * heads
    patch_size = window_size // (P * 4)
    num_patch = C * P * F
    N = num_patch + 1

    keys = iter(jax.random.split(key, 14 + 11 * depth + 4))

    def nrm(shape, scale=0.05):
        return scale * jax.random.normal(next(keys), shape, jnp.float32)

    tp = dict(
        bn_g=1.0 + nrm((C,)), bn_b=nrm((C,)), bn_m=nrm((C,)),
        bn_v=1.0 + jnp.abs(nrm((C,))),
        conv_w=nrm((c_out, C, kernel_size), 0.1), conv_b=nrm((c_out,), 0.1),
        pe_w=nrm((dim, patch_size), 0.1), pe_b=nrm((dim,), 0.1),
        cls=nrm((1, 1, dim), 0.5), pos=nrm((1, N, dim), 0.5),
        lnf_g=1.0 + nrm((dim,)), lnf_b=nrm((dim,)),
        head_w=nrm((num_class, dim), 0.1), head_b=nrm((num_class,), 0.1),
        layers=[],
    )
    for _ in range(depth):
        tp["layers"].append(dict(
            ln1_g=1.0 + nrm((dim,)), ln1_b=nrm((dim,)),
            w_qkv=nrm((3 * inner, dim), 0.1),
            w_o=nrm((dim, inner), 0.1), b_o=nrm((dim,), 0.1),
            ln2_g=1.0 + nrm((dim,)), ln2_b=nrm((dim,)),
            w1=nrm((mlp_dim, dim), 0.1), b1=nrm((mlp_dim,), 0.1),
            w2=nrm((dim, mlp_dim), 0.1), b2=nrm((dim,), 0.1),
        ))
    return tp


def prepare_kernel_params(tp, *, heads, window_size, kernel_size=9, eps=1e-5):
    """Fold BN into the conv, fold the attention scale into Wq, restructure
    attention weights per-head and pre-transpose all Linear weights to
    (in, out) layout for the fused kernel."""
    W, K, pad = window_size, kernel_size, kernel_size // 2

    # --- fold BatchNorm1d (eval) into the conv -------------------------------
    s = tp["bn_g"] * jax.lax.rsqrt(tp["bn_v"] + eps)           # (C,)
    t = tp["bn_b"] - tp["bn_m"] * s                            # (C,)
    cw = tp["conv_w"]                                          # (C_out, C, K)
    conv_w = jnp.transpose(cw, (2, 1, 0)) * s[None, :, None]   # (K, C, C_out)
    # the conv zero-pads the *BN output*, so the shift `t` only contributes
    # where the tap lands inside the valid window -> edge-aware bias.
    tap = jnp.arange(W)[:, None] + jnp.arange(K)[None, :] - pad
    valid = ((tap >= 0) & (tap < W)).astype(jnp.float32)       # (W, K)
    tw = jnp.einsum('c,ock->ko', t, cw)                        # (K, C_out)
    conv_b = tp["conv_b"][None, :] + valid @ tw                # (W, C_out)

    dim = tp["pe_b"].shape[0]
    kp = dict(
        conv_w=conv_w, conv_b=conv_b,
        w_pe=tp["pe_w"].T, b_pe=tp["pe_b"][None, :],
        cls=tp["cls"].reshape(1, dim), pos=tp["pos"].reshape(-1, dim),
        lnf_g=tp["lnf_g"][None, :], lnf_b=tp["lnf_b"][None, :],
        head_w=tp["head_w"].T, head_b=tp["head_b"][None, :],
        layers=[],
    )
    for lt in tp["layers"]:
        inner = lt["w_qkv"].shape[0] // 3
        dh = inner // heads
        scale = dh ** (-0.5)

        def per_head(wpart):                     # (inner, dim) -> (h, dim, dh)
            return jnp.transpose(wpart.reshape(heads, dh, dim), (0, 2, 1))

        wqkv = lt["w_qkv"]
        wq = per_head(wqkv[0 * inner:1 * inner]) * scale       # fold attn scale
        wk = per_head(wqkv[1 * inner:2 * inner])
        wv = per_head(wqkv[2 * inner:3 * inner])
        wo = lt["w_o"].T.reshape(heads, dh, dim)               # (h, dh, dim)
        kp["layers"].append([
            lt["ln1_g"][None, :], lt["ln1_b"][None, :],
            wq, wk, wv, wo, lt["b_o"][None, :],
            lt["ln2_g"][None, :], lt["ln2_b"][None, :],
            lt["w1"].T, lt["b1"][None, :], lt["w2"].T, lt["b2"][None, :],
        ])
    return kp


# ----------------------------------------------------------------------------
# pure-JAX reference (eval-mode PyTorch semantics) for a sanity check
# ----------------------------------------------------------------------------
def vit_tnet_reference(x, tp, *, P, heads, eps=1e-5):
    B, W, C = x.shape
    xc = jnp.transpose(x, (0, 2, 1))                           # (B, C, W)
    s = tp["bn_g"] / jnp.sqrt(tp["bn_v"] + eps)
    xb = (xc - tp["bn_m"][None, :, None]) * s[None, :, None] + tp["bn_b"][None, :, None]
    K = tp["conv_w"].shape[-1]
    pad = K // 2
    y = jax.lax.conv_general_dilated(xb, tp["conv_w"], window_strides=(1,),
                                     padding=[(pad, pad)],
                                     dimension_numbers=("NCH", "OIH", "NCH"))
    y = jnp.maximum(y + tp["conv_b"][None, :, None], 0.0)
    c_out = y.shape[1]
    y = y.reshape(B, c_out, W // 4, 4).max(axis=-1)            # MaxPool1d(4)
    patch_size = W // (P * 4)
    patches = y.reshape(B, -1, patch_size)
    emb = patches @ tp["pe_w"].T + tp["pe_b"]
    dim = emb.shape[-1]
    cls = jnp.broadcast_to(tp["cls"], (B, 1, dim))
    seq = jnp.concatenate([cls, emb], axis=1) + tp["pos"]
    dh = dim // heads

    def ln(z, g, b):
        mu = z.mean(-1, keepdims=True)
        var = ((z - mu) ** 2).mean(-1, keepdims=True)
        return (z - mu) / jnp.sqrt(var + 1e-5) * g + b

    for lt in tp["layers"]:
        zn = ln(seq, lt["ln1_g"], lt["ln1_b"])
        qkv = zn @ lt["w_qkv"].T
        inner = qkv.shape[-1] // 3
        q, k, v = (qkv[..., :inner], qkv[..., inner:2 * inner],
                   qkv[..., 2 * inner:])

        def split(t_):
            return t_.reshape(B, -1, heads, dh).transpose(0, 2, 1, 3)

        q, k, v = split(q), split(k), split(v)
        dots = jnp.einsum('bhnd,bhmd->bhnm', q, k) * (dh ** (-0.5))
        attn = jax.nn.softmax(dots, axis=-1)
        out = jnp.einsum('bhnm,bhmd->bhnd', attn, v)
        out = out.transpose(0, 2, 1, 3).reshape(B, -1, heads * dh)
        seq = seq + out @ lt["w_o"].T + lt["b_o"]
        zn = ln(seq, lt["ln2_g"], lt["ln2_b"])
        h1 = jax.nn.gelu(zn @ lt["w1"].T + lt["b1"], approximate=False)
        seq = seq + h1 @ lt["w2"].T + lt["b2"]
    seq = ln(seq, tp["lnf_g"], tp["lnf_b"])
    return seq[:, 0] @ tp["head_w"].T + tp["head_b"]


# ----------------------------------------------------------------------------
# demo / self-test
# ----------------------------------------------------------------------------
if __name__ == "__main__":
    # small, module-consistent shapes
    B, window_size, num_channel = 2, 16, 4
    F, P = 2, 1
    dim, depth, heads, mlp_dim = 32, 1, 4, 64
    number_gesture, class_rest = 10, False
    num_class = number_gesture + int(class_rest)

    key = jax.random.PRNGKey(0)
    kx, kparam = jax.random.split(key)
    x = jax.random.normal(kx, (B, window_size, num_channel), jnp.float32)
    tp = init_torch_params(kparam, window_size=window_size,
                           num_channel=num_channel, F=F, P=P, dim=dim,
                           depth=depth, heads=heads, mlp_dim=mlp_dim,
                           num_class=num_class)
    kp = prepare_kernel_params(tp, heads=heads, window_size=window_size)

    logits = vit_tnet_forward(x, kp, heads=heads, P=P, pool="cls")
    logits = jax.block_until_ready(logits)
    assert logits.shape == (B, num_class), logits.shape
    assert bool(jnp.all(jnp.isfinite(logits)))

    # sanity check against a pure-JAX reference (loose tolerance: approx
    # softmax reciprocal + MXU matmul precision differences).
    with jax.default_matmul_precision("highest"):
        ref = vit_tnet_reference(x, tp, P=P, heads=heads)
    max_err = float(jnp.max(jnp.abs(logits - ref)))
    assert max_err < 0.1, f"mismatch vs reference: {max_err}"

    print("KERNEL_OK")
</pallas_src>

<mosaic_0001>
module attributes {stable_mosaic.version = 11 : i64} {
  func.func @_fused_kernel(%arg0: i32, %arg1: memref<1x24x4xf32, #tpu.memory_space<vmem>>, %arg2: memref<9x4x8xf32, #tpu.memory_space<vmem>>, %arg3: memref<16x8xf32, #tpu.memory_space<vmem>>, %arg4: memref<4x32xf32, #tpu.memory_space<vmem>>, %arg5: memref<1x32xf32, #tpu.memory_space<vmem>>, %arg6: memref<1x32xf32, #tpu.memory_space<vmem>>, %arg7: memref<9x32xf32, #tpu.memory_space<vmem>>, %arg8: memref<1x32xf32, #tpu.memory_space<vmem>>, %arg9: memref<1x32xf32, #tpu.memory_space<vmem>>, %arg10: memref<4x32x8xf32, #tpu.memory_space<vmem>>, %arg11: memref<4x32x8xf32, #tpu.memory_space<vmem>>, %arg12: memref<4x32x8xf32, #tpu.memory_space<vmem>>, %arg13: memref<4x8x32xf32, #tpu.memory_space<vmem>>, %arg14: memref<1x32xf32, #tpu.memory_space<vmem>>, %arg15: memref<1x32xf32, #tpu.memory_space<vmem>>, %arg16: memref<1x32xf32, #tpu.memory_space<vmem>>, %arg17: memref<32x64xf32, #tpu.memory_space<vmem>>, %arg18: memref<1x64xf32, #tpu.memory_space<vmem>>, %arg19: memref<64x32xf32, #tpu.memory_space<vmem>>, %arg20: memref<1x32xf32, #tpu.memory_space<vmem>>, %arg21: memref<1x32xf32, #tpu.memory_space<vmem>>, %arg22: memref<1x32xf32, #tpu.memory_space<vmem>>, %arg23: memref<32x10xf32, #tpu.memory_space<vmem>>, %arg24: memref<1x10xf32, #tpu.memory_space<vmem>>, %arg25: memref<1x1x10xf32, #tpu.memory_space<vmem>>) attributes {dimension_semantics = [#tpu.dimension_semantics<parallel>], iteration_bounds = array<i64: 2>, scalar_prefetch = 0 : i64, scratch_operands = 0 : i64, tpu.core_type = #tpu.core_type<tc>, window_params = [{transform_indices = @transform_0, window_bounds = array<i64: 1, 24, 4>}, {pipeline_mode = #tpu.pipeline_mode<synchronous>, transform_indices = @transform_1, window_bounds = array<i64: 9, 4, 8>}, {pipeline_mode = #tpu.pipeline_mode<synchronous>, transform_indices = @transform_2, window_bounds = array<i64: 16, 8>}, {pipeline_mode = #tpu.pipeline_mode<synchronous>, transform_indices = @transform_3, window_bounds = array<i64: 4, 32>}, {pipeline_mode = #tpu.pipeline_mode<synchronous>, transform_indices = @transform_4, window_bounds = array<i64: 1, 32>}, {pipeline_mode = #tpu.pipeline_mode<synchronous>, transform_indices = @transform_5, window_bounds = array<i64: 1, 32>}, {pipeline_mode = #tpu.pipeline_mode<synchronous>, transform_indices = @transform_6, window_bounds = array<i64: 9, 32>}, {pipeline_mode = #tpu.pipeline_mode<synchronous>, transform_indices = @transform_7, window_bounds = array<i64: 1, 32>}, {pipeline_mode = #tpu.pipeline_mode<synchronous>, transform_indices = @transform_8, window_bounds = array<i64: 1, 32>}, {pipeline_mode = #tpu.pipeline_mode<synchronous>, transform_indices = @transform_9, window_bounds = array<i64: 4, 32, 8>}, {pipeline_mode = #tpu.pipeline_mode<synchronous>, transform_indices = @transform_10, window_bounds = array<i64: 4, 32, 8>}, {pipeline_mode = #tpu.pipeline_mode<synchronous>, transform_indices = @transform_11, window_bounds = array<i64: 4, 32, 8>}, {pipeline_mode = #tpu.pipeline_mode<synchronous>, transform_indices = @transform_12, window_bounds = array<i64: 4, 8, 32>}, {pipeline_mode = #tpu.pipeline_mode<synchronous>, transform_indices = @transform_13, window_bounds = array<i64: 1, 32>}, {pipeline_mode = #tpu.pipeline_mode<synchronous>, transform_indices = @transform_14, window_bounds = array<i64: 1, 32>}, {pipeline_mode = #tpu.pipeline_mode<synchronous>, transform_indices = @transform_15, window_bounds = array<i64: 1, 32>}, {pipeline_mode = #tpu.pipeline_mode<synchronous>, transform_indices = @transform_16, window_bounds = array<i64: 32, 64>}, {pipeline_mode = #tpu.pipeline_mode<synchronous>, transform_indices = @transform_17, window_bounds = array<i64: 1, 64>}, {pipeline_mode = #tpu.pipeline_mode<synchronous>, transform_indices = @transform_18, window_bounds = array<i64: 64, 32>}, {pipeline_mode = #tpu.pipeline_mode<synchronous>, transform_indices = @transform_19, window_bounds = array<i64: 1, 32>}, {pipeline_mode = #tpu.pipeline_mode<synchronous>, transform_indices = @transform_20, window_bounds = array<i64: 1, 32>}, {pipeline_mode = #tpu.pipeline_mode<synchronous>, transform_indices = @transform_21, window_bounds = array<i64: 1, 32>}, {pipeline_mode = #tpu.pipeline_mode<synchronous>, transform_indices = @transform_22, window_bounds = array<i64: 32, 10>}, {pipeline_mode = #tpu.pipeline_mode<synchronous>, transform_indices = @transform_23, window_bounds = array<i64: 1, 10>}, {transform_indices = @transform_24, window_bounds = array<i64: 1, 1, 10>}]} {
    %c0 = arith.constant 0 : index
    %c0_0 = arith.constant 0 : index
    %c0_1 = arith.constant 0 : index
    %0 = vector.load %arg1[%c0, %c0_0, %c0_1] : memref<1x24x4xf32, #tpu.memory_space<vmem>>, vector<1x24x4xf32>
    %1 = vector.shape_cast %0 : vector<1x24x4xf32> to vector<24x4xf32>
    %c0_2 = arith.constant 0 : index
    %c0_3 = arith.constant 0 : index
    %2 = vector.load %arg3[%c0_2, %c0_3] : memref<16x8xf32, #tpu.memory_space<vmem>>, vector<16x8xf32>
    %3 = vector.extract_strided_slice %1 {offsets = [0, 0], sizes = [16, 4], strides = [1, 1]} : vector<24x4xf32> to vector<16x4xf32>
    %c0_4 = arith.constant 0 : index
    %c0_5 = arith.constant 0 : index
    %c0_6 = arith.constant 0 : index
    %4 = vector.load %arg2[%c0_4, %c0_5, %c0_6] : memref<9x4x8xf32, #tpu.memory_space<vmem>>, vector<1x4x8xf32>
    %5 = vector.shape_cast %4 : vector<1x4x8xf32> to vector<4x8xf32>
    %cst = arith.constant dense<0.000000e+00> : vector<16x8xf32>
    %6 = tpu.matmul %3, %5, %cst {dimension_numbers = #tpu.dot_dimension_numbers<[1], [0], [0], [1], [0, 0, 1, 1], [], []>} : vector<16x4xf32>, vector<4x8xf32>, vector<16x8xf32> -> vector<16x8xf32>
    %7 = arith.addf %2, %6 : vector<16x8xf32>
    %8 = vector.extract_strided_slice %1 {offsets = [1, 0], sizes = [16, 4], strides = [1, 1]} : vector<24x4xf32> to vector<16x4xf32>
    %c1 = arith.constant 1 : index
    %c0_7 = arith.constant 0 : index
    %c0_8 = arith.constant 0 : index
    %9 = vector.load %arg2[%c1, %c0_7, %c0_8] : memref<9x4x8xf32, #tpu.memory_space<vmem>>, vector<1x4x8xf32>
    %10 = vector.shape_cast %9 : vector<1x4x8xf32> to vector<4x8xf32>
    %cst_9 = arith.constant dense<0.000000e+00> : vector<16x8xf32>
    %11 = tpu.matmul %8, %10, %cst_9 {dimension_numbers = #tpu.dot_dimension_numbers<[1], [0], [0], [1], [0, 0, 1, 1], [], []>} : vector<16x4xf32>, vector<4x8xf32>, vector<16x8xf32> -> vector<16x8xf32>
    %12 = arith.addf %7, %11 : vector<16x8xf32>
    %13 = vector.extract_strided_slice %1 {offsets = [2, 0], sizes = [16, 4], strides = [1, 1]} : vector<24x4xf32> to vector<16x4xf32>
    %c2 = arith.constant 2 : index
    %c0_10 = arith.constant 0 : index
    %c0_11 = arith.constant 0 : index
    %14 = vector.load %arg2[%c2, %c0_10, %c0_11] : memref<9x4x8xf32, #tpu.memory_space<vmem>>, vector<1x4x8xf32>
    %15 = vector.shape_cast %14 : vector<1x4x8xf32> to vector<4x8xf32>
    %cst_12 = arith.constant dense<0.000000e+00> : vector<16x8xf32>
    %16 = tpu.matmul %13, %15, %cst_12 {dimension_numbers = #tpu.dot_dimension_numbers<[1], [0], [0], [1], [0, 0, 1, 1], [], []>} : vector<16x4xf32>, vector<4x8xf32>, vector<16x8xf32> -> vector<16x8xf32>
    %17 = arith.addf %12, %16 : vector<16x8xf32>
    %18 = vector.extract_strided_slice %1 {offsets = [3, 0], sizes = [16, 4], strides = [1, 1]} : vector<24x4xf32> to vector<16x4xf32>
    %c3 = arith.constant 3 : index
    %c0_13 = arith.constant 0 : index
    %c0_14 = arith.constant 0 : index
    %19 = vector.load %arg2[%c3, %c0_13, %c0_14] : memref<9x4x8xf32, #tpu.memory_space<vmem>>, vector<1x4x8xf32>
    %20 = vector.shape_cast %19 : vector<1x4x8xf32> to vector<4x8xf32>
    %cst_15 = arith.constant dense<0.000000e+00> : vector<16x8xf32>
    %21 = tpu.matmul %18, %20, %cst_15 {dimension_numbers = #tpu.dot_dimension_numbers<[1], [0], [0], [1], [0, 0, 1, 1], [], []>} : vector<16x4xf32>, vector<4x8xf32>, vector<16x8xf32> -> vector<16x8xf32>
    %22 = arith.addf %17, %21 : vector<16x8xf32>
    %23 = vector.extract_strided_slice %1 {offsets = [4, 0], sizes = [16, 4], strides = [1, 1]} : vector<24x4xf32> to vector<16x4xf32>
    %c4 = arith.constant 4 : index
    %c0_16 = arith.constant 0 : index
    %c0_17 = arith.constant 0 : index
    %24 = vector.load %arg2[%c4, %c0_16, %c0_17] : memref<9x4x8xf32, #tpu.memory_space<vmem>>, vector<1x4x8xf32>
    %25 = vector.shape_cast %24 : vector<1x4x8xf32> to vector<4x8xf32>
    %cst_18 = arith.constant dense<0.000000e+00> : vector<16x8xf32>
    %26 = tpu.matmul %23, %25, %cst_18 {dimension_numbers = #tpu.dot_dimension_numbers<[1], [0], [0], [1], [0, 0, 1, 1], [], []>} : vector<16x4xf32>, vector<4x8xf32>, vector<16x8xf32> -> vector<16x8xf32>
    %27 = arith.addf %22, %26 : vector<16x8xf32>
    %28 = vector.extract_strided_slice %1 {offsets = [5, 0], sizes = [16, 4], strides = [1, 1]} : vector<24x4xf32> to vector<16x4xf32>
    %c5 = arith.constant 5 : index
    %c0_19 = arith.constant 0 : index
    %c0_20 = arith.constant 0 : index
    %29 = vector.load %arg2[%c5, %c0_19, %c0_20] : memref<9x4x8xf32, #tpu.memory_space<vmem>>, vector<1x4x8xf32>
    %30 = vector.shape_cast %29 : vector<1x4x8xf32> to vector<4x8xf32>
    %cst_21 = arith.constant dense<0.000000e+00> : vector<16x8xf32>
    %31 = tpu.matmul %28, %30, %cst_21 {dimension_numbers = #tpu.dot_dimension_numbers<[1], [0], [0], [1], [0, 0, 1, 1], [], []>} : vector<16x4xf32>, vector<4x8xf32>, vector<16x8xf32> -> vector<16x8xf32>
    %32 = arith.addf %27, %31 : vector<16x8xf32>
    %33 = vector.extract_strided_slice %1 {offsets = [6, 0], sizes = [16, 4], strides = [1, 1]} : vector<24x4xf32> to vector<16x4xf32>
    %c6 = arith.constant 6 : index
    %c0_22 = arith.constant 0 : index
    %c0_23 = arith.constant 0 : index
    %34 = vector.load %arg2[%c6, %c0_22, %c0_23] : memref<9x4x8xf32, #tpu.memory_space<vmem>>, vector<1x4x8xf32>
    %35 = vector.shape_cast %34 : vector<1x4x8xf32> to vector<4x8xf32>
    %cst_24 = arith.constant dense<0.000000e+00> : vector<16x8xf32>
    %36 = tpu.matmul %33, %35, %cst_24 {dimension_numbers = #tpu.dot_dimension_numbers<[1], [0], [0], [1], [0, 0, 1, 1], [], []>} : vector<16x4xf32>, vector<4x8xf32>, vector<16x8xf32> -> vector<16x8xf32>
    %37 = arith.addf %32, %36 : vector<16x8xf32>
    %38 = vector.extract_strided_slice %1 {offsets = [7, 0], sizes = [16, 4], strides = [1, 1]} : vector<24x4xf32> to vector<16x4xf32>
    %c7 = arith.constant 7 : index
    %c0_25 = arith.constant 0 : index
    %c0_26 = arith.constant 0 : index
    %39 = vector.load %arg2[%c7, %c0_25, %c0_26] : memref<9x4x8xf32, #tpu.memory_space<vmem>>, vector<1x4x8xf32>
    %40 = vector.shape_cast %39 : vector<1x4x8xf32> to vector<4x8xf32>
    %cst_27 = arith.constant dense<0.000000e+00> : vector<16x8xf32>
    %41 = tpu.matmul %38, %40, %cst_27 {dimension_numbers = #tpu.dot_dimension_numbers<[1], [0], [0], [1], [0, 0, 1, 1], [], []>} : vector<16x4xf32>, vector<4x8xf32>, vector<16x8xf32> -> vector<16x8xf32>
    %42 = arith.addf %37, %41 : vector<16x8xf32>
    %43 = vector.extract_strided_slice %1 {offsets = [8, 0], sizes = [16, 4], strides = [1, 1]} : vector<24x4xf32> to vector<16x4xf32>
    %c8 = arith.constant 8 : index
    %c0_28 = arith.constant 0 : index
    %c0_29 = arith.constant 0 : index
    %44 = vector.load %arg2[%c8, %c0_28, %c0_29] : memref<9x4x8xf32, #tpu.memory_space<vmem>>, vector<1x4x8xf32>
    %45 = vector.shape_cast %44 : vector<1x4x8xf32> to vector<4x8xf32>
    %cst_30 = arith.constant dense<0.000000e+00> : vector<16x8xf32>
    %46 = tpu.matmul %43, %45, %cst_30 {dimension_numbers = #tpu.dot_dimension_numbers<[1], [0], [0], [1], [0, 0, 1, 1], [], []>} : vector<16x4xf32>, vector<4x8xf32>, vector<16x8xf32> -> vector<16x8xf32>
    %47 = arith.addf %42, %46 : vector<16x8xf32>
    %cst_31 = arith.constant 0.000000e+00 : f32
    %48 = vector.broadcast %cst_31 : f32 to vector<16x8xf32>
    %49 = arith.maximumf %47, %48 : vector<16x8xf32>
    %50 = vector.extract_strided_slice %49 {offsets = [0, 0], sizes = [4, 8], strides = [1, 1]} : vector<16x8xf32> to vector<4x8xf32>
    %cst_32 = arith.constant dense<0xFF800000> : vector<8xf32>
    %51 = vector.multi_reduction <maximumf>, %50, %cst_32 [0] : vector<4x8xf32> to vector<8xf32>
    %52 = vector.shape_cast %51 : vector<8xf32> to vector<1x8xf32>
    %53 = vector.extract_strided_slice %49 {offsets = [4, 0], sizes = [4, 8], strides = [1, 1]} : vector<16x8xf32> to vector<4x8xf32>
    %cst_33 = arith.constant dense<0xFF800000> : vector<8xf32>
    %54 = vector.multi_reduction <maximumf>, %53, %cst_33 [0] : vector<4x8xf32> to vector<8xf32>
    %55 = vector.shape_cast %54 : vector<8xf32> to vector<1x8xf32>
    %56 = vector.extract_strided_slice %49 {offsets = [8, 0], sizes = [4, 8], strides = [1, 1]} : vector<16x8xf32> to vector<4x8xf32>
    %cst_34 = arith.constant dense<0xFF800000> : vector<8xf32>
    %57 = vector.multi_reduction <maximumf>, %56, %cst_34 [0] : vector<4x8xf32> to vector<8xf32>
    %58 = vector.shape_cast %57 : vector<8xf32> to vector<1x8xf32>
    %59 = vector.extract_strided_slice %49 {offsets = [12, 0], sizes = [4, 8], strides = [1, 1]} : vector<16x8xf32> to vector<4x8xf32>
    %cst_35 = arith.constant dense<0xFF800000> : vector<8xf32>
    %60 = vector.multi_reduction <maximumf>, %59, %cst_35 [0] : vector<4x8xf32> to vector<8xf32>
    %61 = vector.shape_cast %60 : vector<8xf32> to vector<1x8xf32>
    %62 = tpu.concatenate %52, %55, %58, %61 in 0 : vector<1x8xf32>, vector<1x8xf32>, vector<1x8xf32>, vector<1x8xf32> -> vector<4x8xf32>
    %63 = tpu.transpose %62, [1, 0] : vector<4x8xf32> -> vector<8x4xf32>
    %c0_36 = arith.constant 0 : index
    %c0_37 = arith.constant 0 : index
    %64 = vector.load %arg4[%c0_36, %c0_37] : memref<4x32xf32, #tpu.memory_space<vmem>>, vector<4x32xf32>
    %cst_38 = arith.constant dense<0.000000e+00> : vector<8x32xf32>
    %65 = tpu.matmul %63, %64, %cst_38 {dimension_numbers = #tpu.dot_dimension_numbers<[1], [0], [0], [1], [0, 0, 1, 1], [], []>} : vector<8x4xf32>, vector<4x32xf32>, vector<8x32xf32> -> vector<8x32xf32>
    %c0_39 = arith.constant 0 : index
    %c0_40 = arith.constant 0 : index
    %66 = vector.load %arg5[%c0_39, %c0_40] : memref<1x32xf32, #tpu.memory_space<vmem>>, vector<1x32xf32>
    %67 = vector.broadcast %66 : vector<1x32xf32> to vector<8x32xf32>
    %68 = arith.addf %65, %67 : vector<8x32xf32>
    %c0_41 = arith.constant 0 : index
    %c0_42 = arith.constant 0 : index
    %69 = vector.load %arg6[%c0_41, %c0_42] : memref<1x32xf32, #tpu.memory_space<vmem>>, vector<1x32xf32>
    %70 = tpu.concatenate %69, %68 in 0 : vector<1x32xf32>, vector<8x32xf32> -> vector<9x32xf32>
    %c0_43 = arith.constant 0 : index
    %c0_44 = arith.constant 0 : index
    %71 = vector.load %arg7[%c0_43, %c0_44] : memref<9x32xf32, #tpu.memory_space<vmem>>, vector<9x32xf32>
    %72 = arith.addf %70, %71 : vector<9x32xf32>
    %c0_45 = arith.constant 0 : index
    %c0_46 = arith.constant 0 : index
    %73 = vector.load %arg8[%c0_45, %c0_46] : memref<1x32xf32, #tpu.memory_space<vmem>>, vector<1x32xf32>
    %c0_47 = arith.constant 0 : index
    %c0_48 = arith.constant 0 : index
    %74 = vector.load %arg9[%c0_47, %c0_48] : memref<1x32xf32, #tpu.memory_space<vmem>>, vector<1x32xf32>
    %cst_49 = arith.constant dense<0.000000e+00> : vector<9xf32>
    %75 = vector.multi_reduction <add>, %72, %cst_49 [1] : vector<9x32xf32> to vector<9xf32>
    %76 = vector.shape_cast %75 : vector<9xf32> to vector<9x1xf32>
    %cst_50 = arith.constant 3.200000e+01 : f32
    %77 = vector.broadcast %cst_50 : f32 to vector<9x1xf32>
    %78 = arith.divf %76, %77 : vector<9x1xf32>
    %79 = vector.broadcast %78 : vector<9x1xf32> to vector<9x32xf32>
    %80 = arith.subf %72, %79 : vector<9x32xf32>
    %81 = arith.mulf %80, %80 : vector<9x32xf32>
    %cst_51 = arith.constant dense<0.000000e+00> : vector<9xf32>
    %82 = vector.multi_reduction <add>, %81, %cst_51 [1] : vector<9x32xf32> to vector<9xf32>
    %83 = vector.shape_cast %82 : vector<9xf32> to vector<9x1xf32>
    %cst_52 = arith.constant 3.200000e+01 : f32
    %84 = vector.broadcast %cst_52 : f32 to vector<9x1xf32>
    %85 = arith.divf %83, %84 : vector<9x1xf32>
    %86 = vector.broadcast %78 : vector<9x1xf32> to vector<9x32xf32>
    %87 = arith.subf %72, %86 : vector<9x32xf32>
    %cst_53 = arith.constant 9.99999974E-6 : f32
    %88 = vector.broadcast %cst_53 : f32 to vector<9x1xf32>
    %89 = arith.addf %85, %88 : vector<9x1xf32>
    %90 = math.rsqrt %89 : vector<9x1xf32>
    %91 = vector.broadcast %90 : vector<9x1xf32> to vector<9x32xf32>
    %92 = arith.mulf %87, %91 : vector<9x32xf32>
    %93 = vector.broadcast %73 : vector<1x32xf32> to vector<9x32xf32>
    %94 = arith.mulf %92, %93 : vector<9x32xf32>
    %95 = vector.broadcast %74 : vector<1x32xf32> to vector<9x32xf32>
    %96 = arith.addf %94, %95 : vector<9x32xf32>
    %97 = vector.shape_cast %96 : vector<9x32xf32> to vector<1x9x32xf32>
    %98 = vector.shape_cast %97 : vector<1x9x32xf32> to vector<1x9x32xf32>
    %99 = vector.broadcast %98 : vector<1x9x32xf32> to vector<4x9x32xf32>
    %c0_54 = arith.constant 0 : index
    %c0_55 = arith.constant 0 : index
    %c0_56 = arith.constant 0 : index
    %100 = vector.load %arg10[%c0_54, %c0_55, %c0_56] : memref<4x32x8xf32, #tpu.memory_space<vmem>>, vector<4x32x8xf32>
    "tpu.trace_start"() <{level = 10 : i32, message = "hnd,hde->hne"}> : () -> ()
    %cst_57 = arith.constant dense<0.000000e+00> : vector<4x9x8xf32>
    %101 = tpu.matmul %99, %100, %cst_57 {dimension_numbers = #tpu.dot_dimension_numbers<[2], [1], [1], [2], [0, 0, 0, 1, 1, 2], [0], [0]>} : vector<4x9x32xf32>, vector<4x32x8xf32>, vector<4x9x8xf32> -> vector<4x9x8xf32>
    "tpu.trace_stop"() : () -> ()
    %c0_58 = arith.constant 0 : index
    %c0_59 = arith.constant 0 : index
    %c0_60 = arith.constant 0 : index
    %102 = vector.load %arg11[%c0_58, %c0_59, %c0_60] : memref<4x32x8xf32, #tpu.memory_space<vmem>>, vector<4x32x8xf32>
    "tpu.trace_start"() <{level = 10 : i32, message = "hnd,hde->hne"}> : () -> ()
    %cst_61 = arith.constant dense<0.000000e+00> : vector<4x9x8xf32>
    %103 = tpu.matmul %99, %102, %cst_61 {dimension_numbers = #tpu.dot_dimension_numbers<[2], [1], [1], [2], [0, 0, 0, 1, 1, 2], [0], [0]>} : vector<4x9x32xf32>, vector<4x32x8xf32>, vector<4x9x8xf32> -> vector<4x9x8xf32>
    "tpu.trace_stop"() : () -> ()
    %c0_62 = arith.constant 0 : index
    %c0_63 = arith.constant 0 : index
    %c0_64 = arith.constant 0 : index
    %104 = vector.load %arg12[%c0_62, %c0_63, %c0_64] : memref<4x32x8xf32, #tpu.memory_space<vmem>>, vector<4x32x8xf32>
    "tpu.trace_start"() <{level = 10 : i32, message = "hnd,hde->hne"}> : () -> ()
    %cst_65 = arith.constant dense<0.000000e+00> : vector<4x9x8xf32>
    %105 = tpu.matmul %99, %104, %cst_65 {dimension_numbers = #tpu.dot_dimension_numbers<[2], [1], [1], [2], [0, 0, 0, 1, 1, 2], [0], [0]>} : vector<4x9x32xf32>, vector<4x32x8xf32>, vector<4x9x8xf32> -> vector<4x9x8xf32>
    "tpu.trace_stop"() : () -> ()
    "tpu.trace_start"() <{level = 10 : i32, message = "hnd,hmd->hnm"}> : () -> ()
    %cst_66 = arith.constant dense<0.000000e+00> : vector<4x9x9xf32>
    %106 = tpu.matmul %101, %103, %cst_66 {dimension_numbers = #tpu.dot_dimension_numbers<[2], [2], [1], [1], [0, 0, 0, 1, 1, 1], [0], [0]>} : vector<4x9x8xf32>, vector<4x9x8xf32>, vector<4x9x9xf32> -> vector<4x9x9xf32>
    "tpu.trace_stop"() : () -> ()
    %cst_67 = arith.constant dense<0xFF800000> : vector<4x9xf32>
    %107 = vector.multi_reduction <maximumf>, %106, %cst_67 [2] : vector<4x9x9xf32> to vector<4x9xf32>
    %108 = vector.shape_cast %107 : vector<4x9xf32> to vector<4x9x1xf32>
    %109 = vector.broadcast %108 : vector<4x9x1xf32> to vector<4x9x9xf32>
    %110 = arith.subf %106, %109 : vector<4x9x9xf32>
    %111 = math.exp %110 : vector<4x9x9xf32>
    %cst_68 = arith.constant dense<0.000000e+00> : vector<4x9xf32>
    %112 = vector.multi_reduction <add>, %111, %cst_68 [2] : vector<4x9x9xf32> to vector<4x9xf32>
    %113 = vector.shape_cast %112 : vector<4x9xf32> to vector<4x9x1xf32>
    %114 = tpu.reciprocal %113 {approx = true} : vector<4x9x1xf32> -> vector<4x9x1xf32>
    %115 = vector.broadcast %114 : vector<4x9x1xf32> to vector<4x9x9xf32>
    %116 = arith.mulf %111, %115 : vector<4x9x9xf32>
    "tpu.trace_start"() <{level = 10 : i32, message = "hnm,hmd->hnd"}> : () -> ()
    %cst_69 = arith.constant dense<0.000000e+00> : vector<4x9x8xf32>
    %117 = tpu.matmul %116, %105, %cst_69 {dimension_numbers = #tpu.dot_dimension_numbers<[2], [1], [1], [2], [0, 0, 0, 1, 1, 2], [0], [0]>} : vector<4x9x9xf32>, vector<4x9x8xf32>, vector<4x9x8xf32> -> vector<4x9x8xf32>
    "tpu.trace_stop"() : () -> ()
    %c0_70 = arith.constant 0 : index
    %c0_71 = arith.constant 0 : index
    %c0_72 = arith.constant 0 : index
    %118 = vector.load %arg13[%c0_70, %c0_71, %c0_72] : memref<4x8x32xf32, #tpu.memory_space<vmem>>, vector<4x8x32xf32>
    "tpu.trace_start"() <{level = 10 : i32, message = "hnd,hde->hne"}> : () -> ()
    %cst_73 = arith.constant dense<0.000000e+00> : vector<4x9x32xf32>
    %119 = tpu.matmul %117, %118, %cst_73 {dimension_numbers = #tpu.dot_dimension_numbers<[2], [1], [1], [2], [0, 0, 0, 1, 1, 2], [0], [0]>} : vector<4x9x8xf32>, vector<4x8x32xf32>, vector<4x9x32xf32> -> vector<4x9x32xf32>
    "tpu.trace_stop"() : () -> ()
    %cst_74 = arith.constant dense<0.000000e+00> : vector<9x32xf32>
    %120 = vector.multi_reduction <add>, %119, %cst_74 [0] : vector<4x9x32xf32> to vector<9x32xf32>
    %121 = arith.addf %72, %120 : vector<9x32xf32>
    %c0_75 = arith.constant 0 : index
    %c0_76 = arith.constant 0 : index
    %122 = vector.load %arg14[%c0_75, %c0_76] : memref<1x32xf32, #tpu.memory_space<vmem>>, vector<1x32xf32>
    %123 = vector.broadcast %122 : vector<1x32xf32> to vector<9x32xf32>
    %124 = arith.addf %121, %123 : vector<9x32xf32>
    %c0_77 = arith.constant 0 : index
    %c0_78 = arith.constant 0 : index
    %125 = vector.load %arg15[%c0_77, %c0_78] : memref<1x32xf32, #tpu.memory_space<vmem>>, vector<1x32xf32>
    %c0_79 = arith.constant 0 : index
    %c0_80 = arith.constant 0 : index
    %126 = vector.load %arg16[%c0_79, %c0_80] : memref<1x32xf32, #tpu.memory_space<vmem>>, vector<1x32xf32>
    %cst_81 = arith.constant dense<0.000000e+00> : vector<9xf32>
    %127 = vector.multi_reduction <add>, %124, %cst_81 [1] : vector<9x32xf32> to vector<9xf32>
    %128 = vector.shape_cast %127 : vector<9xf32> to vector<9x1xf32>
    %cst_82 = arith.constant 3.200000e+01 : f32
    %129 = vector.broadcast %cst_82 : f32 to vector<9x1xf32>
    %130 = arith.divf %128, %129 : vector<9x1xf32>
    %131 = vector.broadcast %130 : vector<9x1xf32> to vector<9x32xf32>
    %132 = arith.subf %124, %131 : vector<9x32xf32>
    %133 = arith.mulf %132, %132 : vector<9x32xf32>
    %cst_83 = arith.constant dense<0.000000e+00> : vector<9xf32>
    %134 = vector.multi_reduction <add>, %133, %cst_83 [1] : vector<9x32xf32> to vector<9xf32>
    %135 = vector.shape_cast %134 : vector<9xf32> to vector<9x1xf32>
    %cst_84 = arith.constant 3.200000e+01 : f32
    %136 = vector.broadcast %cst_84 : f32 to vector<9x1xf32>
    %137 = arith.divf %135, %136 : vector<9x1xf32>
    %138 = vector.broadcast %130 : vector<9x1xf32> to vector<9x32xf32>
    %139 = arith.subf %124, %138 : vector<9x32xf32>
    %cst_85 = arith.constant 9.99999974E-6 : f32
    %140 = vector.broadcast %cst_85 : f32 to vector<9x1xf32>
    %141 = arith.addf %137, %140 : vector<9x1xf32>
    %142 = math.rsqrt %141 : vector<9x1xf32>
    %143 = vector.broadcast %142 : vector<9x1xf32> to vector<9x32xf32>
    %144 = arith.mulf %139, %143 : vector<9x32xf32>
    %145 = vector.broadcast %125 : vector<1x32xf32> to vector<9x32xf32>
    %146 = arith.mulf %144, %145 : vector<9x32xf32>
    %147 = vector.broadcast %126 : vector<1x32xf32> to vector<9x32xf32>
    %148 = arith.addf %146, %147 : vector<9x32xf32>
    %c0_86 = arith.constant 0 : index
    %c0_87 = arith.constant 0 : index
    %149 = vector.load %arg17[%c0_86, %c0_87] : memref<32x64xf32, #tpu.memory_space<vmem>>, vector<32x64xf32>
    %cst_88 = arith.constant dense<0.000000e+00> : vector<9x64xf32>
    %150 = tpu.matmul %148, %149, %cst_88 {dimension_numbers = #tpu.dot_dimension_numbers<[1], [0], [0], [1], [0, 0, 1, 1], [], []>} : vector<9x32xf32>, vector<32x64xf32>, vector<9x64xf32> -> vector<9x64xf32>
    %c0_89 = arith.constant 0 : index
    %c0_90 = arith.constant 0 : index
    %151 = vector.load %arg18[%c0_89, %c0_90] : memref<1x64xf32, #tpu.memory_space<vmem>>, vector<1x64xf32>
    %152 = vector.broadcast %151 : vector<1x64xf32> to vector<9x64xf32>
    %153 = arith.addf %150, %152 : vector<9x64xf32>
    %cst_91 = arith.constant 5.000000e-01 : f32
    %154 = vector.broadcast %cst_91 : f32 to vector<9x64xf32>
    %155 = arith.mulf %154, %153 : vector<9x64xf32>
    %cst_92 = arith.constant 0.707106769 : f32
    %156 = vector.broadcast %cst_92 : f32 to vector<9x64xf32>
    %157 = arith.mulf %153, %156 : vector<9x64xf32>
    %cst_93 = arith.constant 0.000000e+00 : f32
    %158 = vector.broadcast %cst_93 : f32 to vector<9x64xf32>
    %159 = arith.cmpf oge, %157, %158 : vector<9x64xf32>
    %cst_94 = arith.constant 1.000000e+00 : f32
    %cst_95 = arith.constant -1.000000e+00 : f32
    %160 = vector.broadcast %cst_94 : f32 to vector<9x64xf32>
    %161 = vector.broadcast %cst_95 : f32 to vector<9x64xf32>
    %162 = arith.select %159, %160, %161 : vector<9x64xi1>, vector<9x64xf32>
    %163 = math.absf %157 : vector<9x64xf32>
    %cst_96 = arith.constant 0.327591091 : f32
    %164 = vector.broadcast %cst_96 : f32 to vector<9x64xf32>
    %165 = arith.mulf %164, %163 : vector<9x64xf32>
    %cst_97 = arith.constant 1.000000e+00 : f32
    %166 = vector.broadcast %cst_97 : f32 to vector<9x64xf32>
    %167 = arith.addf %166, %165 : vector<9x64xf32>
    %cst_98 = arith.constant 1.000000e+00 : f32
    %168 = vector.broadcast %cst_98 : f32 to vector<9x64xf32>
    %169 = arith.divf %168, %167 : vector<9x64xf32>
    %cst_99 = arith.constant 1.06140542 : f32
    %170 = vector.broadcast %cst_99 : f32 to vector<9x64xf32>
    %171 = arith.mulf %170, %169 : vector<9x64xf32>
    %cst_100 = arith.constant -1.45315206 : f32
    %172 = vector.broadcast %cst_100 : f32 to vector<9x64xf32>
    %173 = arith.addf %171, %172 : vector<9x64xf32>
    %174 = arith.mulf %173, %169 : vector<9x64xf32>
    %cst_101 = arith.constant 1.42141378 : f32
    %175 = vector.broadcast %cst_101 : f32 to vector<9x64xf32>
    %176 = arith.addf %174, %175 : vector<9x64xf32>
    %177 = arith.mulf %176, %169 : vector<9x64xf32>
    %cst_102 = arith.constant -0.284496725 : f32
    %178 = vector.broadcast %cst_102 : f32 to vector<9x64xf32>
    %179 = arith.addf %177, %178 : vector<9x64xf32>
    %180 = arith.mulf %179, %169 : vector<9x64xf32>
    %cst_103 = arith.constant 0.254829586 : f32
    %181 = vector.broadcast %cst_103 : f32 to vector<9x64xf32>
    %182 = arith.addf %180, %181 : vector<9x64xf32>
    %183 = arith.mulf %182, %169 : vector<9x64xf32>
    %cst_104 = arith.constant 0.000000e+00 : f32
    %184 = vector.broadcast %cst_104 : f32 to vector<9x64xf32>
    %185 = arith.subf %184, %163 : vector<9x64xf32>
    %186 = arith.mulf %185, %163 : vector<9x64xf32>
    %187 = math.exp %186 : vector<9x64xf32>
    %188 = arith.mulf %183, %187 : vector<9x64xf32>
    %cst_105 = arith.constant 1.000000e+00 : f32
    %189 = vector.broadcast %cst_105 : f32 to vector<9x64xf32>
    %190 = arith.subf %189, %188 : vector<9x64xf32>
    %191 = arith.mulf %162, %190 : vector<9x64xf32>
    %cst_106 = arith.constant 1.000000e+00 : f32
    %192 = vector.broadcast %cst_106 : f32 to vector<9x64xf32>
    %193 = arith.addf %192, %191 : vector<9x64xf32>
    %194 = arith.mulf %155, %193 : vector<9x64xf32>
    %c0_107 = arith.constant 0 : index
    %c0_108 = arith.constant 0 : index
    %195 = vector.load %arg19[%c0_107, %c0_108] : memref<64x32xf32, #tpu.memory_space<vmem>>, vector<64x32xf32>
    %cst_109 = arith.constant dense<0.000000e+00> : vector<9x32xf32>
    %196 = tpu.matmul %194, %195, %cst_109 {dimension_numbers = #tpu.dot_dimension_numbers<[1], [0], [0], [1], [0, 0, 1, 1], [], []>} : vector<9x64xf32>, vector<64x32xf32>, vector<9x32xf32> -> vector<9x32xf32>
    %c0_110 = arith.constant 0 : index
    %c0_111 = arith.constant 0 : index
    %197 = vector.load %arg20[%c0_110, %c0_111] : memref<1x32xf32, #tpu.memory_space<vmem>>, vector<1x32xf32>
    %198 = vector.broadcast %197 : vector<1x32xf32> to vector<9x32xf32>
    %199 = arith.addf %196, %198 : vector<9x32xf32>
    %200 = arith.addf %124, %199 : vector<9x32xf32>
    %201 = vector.extract_strided_slice %200 {offsets = [0, 0], sizes = [1, 32], strides = [1, 1]} : vector<9x32xf32> to vector<1x32xf32>
    %c0_112 = arith.constant 0 : index
    %c0_113 = arith.constant 0 : index
    %202 = vector.load %arg21[%c0_112, %c0_113] : memref<1x32xf32, #tpu.memory_space<vmem>>, vector<1x32xf32>
    %c0_114 = arith.constant 0 : index
    %c0_115 = arith.constant 0 : index
    %203 = vector.load %arg22[%c0_114, %c0_115] : memref<1x32xf32, #tpu.memory_space<vmem>>, vector<1x32xf32>
    %cst_116 = arith.constant dense<0.000000e+00> : vector<1xf32>
    %204 = vector.multi_reduction <add>, %201, %cst_116 [1] : vector<1x32xf32> to vector<1xf32>
    %205 = vector.shape_cast %204 : vector<1xf32> to vector<1x1xf32>
    %cst_117 = arith.constant 3.200000e+01 : f32
    %206 = vector.broadcast %cst_117 : f32 to vector<1x1xf32>
    %207 = arith.divf %205, %206 : vector<1x1xf32>
    %208 = vector.broadcast %207 : vector<1x1xf32> to vector<1x32xf32>
    %209 = arith.subf %201, %208 : vector<1x32xf32>
    %210 = arith.mulf %209, %209 : vector<1x32xf32>
    %cst_118 = arith.constant dense<0.000000e+00> : vector<1xf32>
    %211 = vector.multi_reduction <add>, %210, %cst_118 [1] : vector<1x32xf32> to vector<1xf32>
    %212 = vector.shape_cast %211 : vector<1xf32> to vector<1x1xf32>
    %cst_119 = arith.constant 3.200000e+01 : f32
    %213 = vector.broadcast %cst_119 : f32 to vector<1x1xf32>
    %214 = arith.divf %212, %213 : vector<1x1xf32>
    %215 = vector.broadcast %207 : vector<1x1xf32> to vector<1x32xf32>
    %216 = arith.subf %201, %215 : vector<1x32xf32>
    %cst_120 = arith.constant 9.99999974E-6 : f32
    %217 = vector.broadcast %cst_120 : f32 to vector<1x1xf32>
    %218 = arith.addf %214, %217 : vector<1x1xf32>
    %219 = math.rsqrt %218 : vector<1x1xf32>
    %220 = vector.broadcast %219 : vector<1x1xf32> to vector<1x32xf32>
    %221 = arith.mulf %216, %220 : vector<1x32xf32>
    %222 = arith.mulf %221, %202 : vector<1x32xf32>
    %223 = arith.addf %222, %203 : vector<1x32xf32>
    %c0_121 = arith.constant 0 : index
    %c0_122 = arith.constant 0 : index
    %224 = vector.load %arg23[%c0_121, %c0_122] : memref<32x10xf32, #tpu.memory_space<vmem>>, vector<32x10xf32>
    %cst_123 = arith.constant dense<0.000000e+00> : vector<1x10xf32>
    %225 = tpu.matmul %223, %224, %cst_123 {dimension_numbers = #tpu.dot_dimension_numbers<[1], [0], [0], [1], [0, 0, 1, 1], [], []>} : vector<1x32xf32>, vector<32x10xf32>, vector<1x10xf32> -> vector<1x10xf32>
    %c0_124 = arith.constant 0 : index
    %c0_125 = arith.constant 0 : index
    %226 = vector.load %arg24[%c0_124, %c0_125] : memref<1x10xf32, #tpu.memory_space<vmem>>, vector<1x10xf32>
    %227 = arith.addf %225, %226 : vector<1x10xf32>
    %c0_126 = arith.constant 0 : index
    %c0_127 = arith.constant 0 : index
    %c0_128 = arith.constant 0 : index
    %228 = vector.load %arg25[%c0_126, %c0_127, %c0_128] : memref<1x1x10xf32, #tpu.memory_space<vmem>>, vector<1x1x10xf32>
    %229 = vector.shape_cast %228 : vector<1x1x10xf32> to vector<1x10xf32>
    %230 = vector.shape_cast %227 : vector<1x10xf32> to vector<1x1x10xf32>
    tpu.vector_store %arg25[%c0_126, %c0_127, %c0_128], %230 {strides = array<i32>} : memref<1x1x10xf32, #tpu.memory_space<vmem>>, vector<1x1x10xf32>,
    return
  }
  func.func @transform_0(%arg0: i32) -> (i32, i32, i32) {
    %c0_i32 = arith.constant 0 : i32
    %c0_i32_0 = arith.constant 0 : i32
    %c0_i32_1 = arith.constant 0 : i32
    return %arg0, %c0_i32, %c0_i32_0 : i32, i32, i32
  }
  func.func @transform_1(%arg0: i32) -> (i32, i32, i32) {
    %c0_i32 = arith.constant 0 : i32
    %c0_i32_0 = arith.constant 0 : i32
    %c0_i32_1 = arith.constant 0 : i32
    %c0_i32_2 = arith.constant 0 : i32
    return %c0_i32, %c0_i32_0, %c0_i32_1 : i32, i32, i32
  }
  func.func @transform_2(%arg0: i32) -> (i32, i32) {
    %c0_i32 = arith.constant 0 : i32
    %c0_i32_0 = arith.constant 0 : i32
    %c0_i32_1 = arith.constant 0 : i32
    return %c0_i32, %c0_i32_0 : i32, i32
  }
  func.func @transform_3(%arg0: i32) -> (i32, i32) {
    %c0_i32 = arith.constant 0 : i32
    %c0_i32_0 = arith.constant 0 : i32
    %c0_i32_1 = arith.constant 0 : i32
    return %c0_i32, %c0_i32_0 : i32, i32
  }
  func.func @transform_4(%arg0: i32) -> (i32, i32) {
    %c0_i32 = arith.constant 0 : i32
    %c0_i32_0 = arith.constant 0 : i32
    %c0_i32_1 = arith.constant 0 : i32
    return %c0_i32, %c0_i32_0 : i32, i32
  }
  func.func @transform_5(%arg0: i32) -> (i32, i32) {
    %c0_i32 = arith.constant 0 : i32
    %c0_i32_0 = arith.constant 0 : i32
    %c0_i32_1 = arith.constant 0 : i32
    return %c0_i32, %c0_i32_0 : i32, i32
  }
  func.func @transform_6(%arg0: i32) -> (i32, i32) {
    %c0_i32 = arith.constant 0 : i32
    %c0_i32_0 = arith.constant 0 : i32
    %c0_i32_1 = arith.constant 0 : i32
    return %c0_i32, %c0_i32_0 : i32, i32
  }
  func.func @transform_7(%arg0: i32) -> (i32, i32) {
    %c0_i32 = arith.constant 0 : i32
    %c0_i32_0 = arith.constant 0 : i32
    %c0_i32_1 = arith.constant 0 : i32
    return %c0_i32, %c0_i32_0 : i32, i32
  }
  func.func @transform_8(%arg0: i32) -> (i32, i32) {
    %c0_i32 = arith.constant 0 : i32
    %c0_i32_0 = arith.constant 0 : i32
    %c0_i32_1 = arith.constant 0 : i32
    return %c0_i32, %c0_i32_0 : i32, i32
  }
  func.func @transform_9(%arg0: i32) -> (i32, i32, i32) {
    %c0_i32 = arith.constant 0 : i32
    %c0_i32_0 = arith.constant 0 : i32
    %c0_i32_1 = arith.constant 0 : i32
    %c0_i32_2 = arith.constant 0 : i32
    return %c0_i32, %c0_i32_0, %c0_i32_1 : i32, i32, i32
  }
  func.func @transform_10(%arg0: i32) -> (i32, i32, i32) {
    %c0_i32 = arith.constant 0 : i32
    %c0_i32_0 = arith.constant 0 : i32
    %c0_i32_1 = arith.constant 0 : i32
    %c0_i32_2 = arith.constant 0 : i32
    return %c0_i32, %c0_i32_0, %c0_i32_1 : i32, i32, i32
  }
  func.func @transform_11(%arg0: i32) -> (i32, i32, i32) {
    %c0_i32 = arith.constant 0 : i32
    %c0_i32_0 = arith.constant 0 : i32
    %c0_i32_1 = arith.constant 0 : i32
    %c0_i32_2 = arith.constant 0 : i32
    return %c0_i32, %c0_i32_0, %c0_i32_1 : i32, i32, i32
  }
  func.func @transform_12(%arg0: i32) -> (i32, i32, i32) {
    %c0_i32 = arith.constant 0 : i32
    %c0_i32_0 = arith.constant 0 : i32
    %c0_i32_1 = arith.constant 0 : i32
    %c0_i32_2 = arith.constant 0 : i32
    return %c0_i32, %c0_i32_0, %c0_i32_1 : i32, i32, i32
  }
  func.func @transform_13(%arg0: i32) -> (i32, i32) {
    %c0_i32 = arith.constant 0 : i32
    %c0_i32_0 = arith.constant 0 : i32
    %c0_i32_1 = arith.constant 0 : i32
    return %c0_i32, %c0_i32_0 : i32, i32
  }
  func.func @transform_14(%arg0: i32) -> (i32, i32) {
    %c0_i32 = arith.constant 0 : i32
    %c0_i32_0 = arith.constant 0 : i32
    %c0_i32_1 = arith.constant 0 : i32
    return %c0_i32, %c0_i32_0 : i32, i32
  }
  func.func @transform_15(%arg0: i32) -> (i32, i32) {
    %c0_i32 = arith.constant 0 : i32
    %c0_i32_0 = arith.constant 0 : i32
    %c0_i32_1 = arith.constant 0 : i32
    return %c0_i32, %c0_i32_0 : i32, i32
  }
  func.func @transform_16(%arg0: i32) -> (i32, i32) {
    %c0_i32 = arith.constant 0 : i32
    %c0_i32_0 = arith.constant 0 : i32
    %c0_i32_1 = arith.constant 0 : i32
    return %c0_i32, %c0_i32_0 : i32, i32
  }
  func.func @transform_17(%arg0: i32) -> (i32, i32) {
    %c0_i32 = arith.constant 0 : i32
    %c0_i32_0 = arith.constant 0 : i32
    %c0_i32_1 = arith.constant 0 : i32
    return %c0_i32, %c0_i32_0 : i32, i32
  }
  func.func @transform_18(%arg0: i32) -> (i32, i32) {
    %c0_i32 = arith.constant 0 : i32
    %c0_i32_0 = arith.constant 0 : i32
    %c0_i32_1 = arith.constant 0 : i32
    return %c0_i32, %c0_i32_0 : i32, i32
  }
  func.func @transform_19(%arg0: i32) -> (i32, i32) {
    %c0_i32 = arith.constant 0 : i32
    %c0_i32_0 = arith.constant 0 : i32
    %c0_i32_1 = arith.constant 0 : i32
    return %c0_i32, %c0_i32_0 : i32, i32
  }
  func.func @transform_20(%arg0: i32) -> (i32, i32) {
    %c0_i32 = arith.constant 0 : i32
    %c0_i32_0 = arith.constant 0 : i32
    %c0_i32_1 = arith.constant 0 : i32
    return %c0_i32, %c0_i32_0 : i32, i32
  }
  func.func @transform_21(%arg0: i32) -> (i32, i32) {
    %c0_i32 = arith.constant 0 : i32
    %c0_i32_0 = arith.constant 0 : i32
    %c0_i32_1 = arith.constant 0 : i32
    return %c0_i32, %c0_i32_0 : i32, i32
  }
  func.func @transform_22(%arg0: i32) -> (i32, i32) {
    %c0_i32 = arith.constant 0 : i32
    %c0_i32_0 = arith.constant 0 : i32
    %c0_i32_1 = arith.constant 0 : i32
    return %c0_i32, %c0_i32_0 : i32, i32
  }
  func.func @transform_23(%arg0: i32) -> (i32, i32) {
    %c0_i32 = arith.constant 0 : i32
    %c0_i32_0 = arith.constant 0 : i32
    %c0_i32_1 = arith.constant 0 : i32
    return %c0_i32, %c0_i32_0 : i32, i32
  }
  func.func @transform_24(%arg0: i32) -> (i32, i32, i32) {
    %c0_i32 = arith.constant 0 : i32
    %c0_i32_0 = arith.constant 0 : i32
    %c0_i32_1 = arith.constant 0 : i32
    return %arg0, %c0_i32, %c0_i32_0 : i32, i32, i32
  }
}

</mosaic_0001>

<bundles_post_ra>
// kernel: tpu_custom_call.1
= control target key start
LH: loop header
LB: loop body
LE: loop exit
PB: predicated region body
PF: predicated region fallthrough
CT: control target
= control target key end

     0   :  { %s3392_s0 = inlined_call_operand.vmem [shape: f32[2,24,4], index: 0, kind: input, shape index: {}]   ;;  %s3393_s1 = inlined_call_operand.vmem [shape: f32[9,4,8], index: 1, kind: input, shape index: {}]   ;;  %s3394_s2 = inlined_call_operand.vmem [shape: f32[16,8], index: 2, kind: input, shape index: {}]   ;;  %s3395_s3 = inlined_call_operand.vmem [shape: f32[4,32], index: 3, kind: input, shape index: {}]   ;;  %s3396_s4 = inlined_call_operand.vmem [shape: f32[1,32], index: 4, kind: input, shape index: {}]   ;;  %s3397_s5 = inlined_call_operand.vmem [shape: f32[1,32], index: 5, kind: input, shape index: {}]   ;;  %s3398_s6 = inlined_call_operand.vmem [shape: f32[9,32], index: 6, kind: input, shape index: {}]   ;;  %s3399_s7 = inlined_call_operand.vmem [shape: f32[1,32], index: 7, kind: input, shape index: {}]   ;;  %s3400_s8 = inlined_call_operand.vmem [shape: f32[1,32], index: 8, kind: input, shape index: {}]   ;;  %s3401_s9 = inlined_call_operand.vmem [shape: f32[4,32,8], index: 9, kind: input, shape index: {}]   ;;  %s3402_s10 = inlined_call_operand.vmem [shape: f32[4,32,8], index: 10, kind: input, shape index: {}]   ;;  %s3403_s11 = inlined_call_operand.vmem [shape: f32[4,32,8], index: 11, kind: input, shape index: {}]   ;;  %s3404_s12 = inlined_call_operand.vmem [shape: f32[4,8,32], index: 12, kind: input, shape index: {}]   ;;  %s3405_s13 = inlined_call_operand.vmem [shape: f32[1,32], index: 13, kind: input, shape index: {}]   ;;  %s3406_s14 = inlined_call_operand.vmem [shape: f32[1,32], index: 14, kind: input, shape index: {}]   ;;  %s3407_s15 = inlined_call_operand.vmem [shape: f32[1,32], index: 15, kind: input, shape index: {}]   ;;  %s3408_s16 = inlined_call_operand.vmem [shape: f32[32,64], index: 16, kind: input, shape index: {}]   ;;  %s3409_s17 = inlined_call_operand.vmem [shape: f32[1,64], index: 17, kind: input, shape index: {}]   ;;  %s3410_s18 = inlined_call_operand.vmem [shape: f32[64,32], index: 18, kind: input, shape index: {}]   ;;  %s3411_s19 = inlined_call_operand.vmem [shape: f32[1,32], index: 19, kind: input, shape index: {}]   ;;  %s3412_s20 = inlined_call_operand.vmem [shape: f32[1,32], index: 20, kind: input, shape index: {}]   ;;  %s3413_s21 = inlined_call_operand.vmem [shape: f32[1,32], index: 21, kind: input, shape index: {}]   ;;  %s3414_s22 = inlined_call_operand.vmem [shape: f32[32,10], index: 22, kind: input, shape index: {}]   ;;  %s3415_s23 = inlined_call_operand.vmem [shape: f32[1,10], index: 23, kind: input, shape index: {}]   ;;  %s3416_s24 = inlined_call_operand.hbm [shape: f32[2,1,10], index: 24, kind: output, shape index: {}]  }
   0x1   :  { %3429 = sst [smem:[#allocation11_spill]] %s3392_s0 }
   0x2   :  { %3430 = sst [smem:[#allocation12_spill]] %s3393_s1 }
   0x3   :  { %3431 = sst [smem:[#allocation13_spill]] %s3394_s2 }
   0x4   :  { %3432 = sst [smem:[#allocation14_spill]] %s3395_s3 }
   0x5   :  { %3433 = sst [smem:[#allocation15_spill]] %s3396_s4 }
   0x6   :  { %3434 = sst [smem:[#allocation16_spill]] %s3397_s5 }
   0x7   :  { %3435 = sst [smem:[#allocation17_spill]] %s3398_s6 }
   0x8   :  { %3436 = sst [smem:[#allocation18_spill]] %s3399_s7 }
   0x9   :  { %3437 = sst [smem:[#allocation19_spill]] %s3400_s8 }
   0xa   :  { %3438 = sst [smem:[#allocation20_spill]] %s3401_s9 }
   0xb   :  { %29 = vsyncpa [#allocation3], 0 }
   0xc   :  { %31 = vsyncpa [#allocation3 + $0x1], 0  ;;  %s2834_s5 = smov 0   ;;  %s2836_s26 = smov 0  }
   0xd   :  { %s2838_s27 = smov 0   ;;  %s2840_s28 = smov 0  }
   0xe LB: > { %3439 = sst [smem:[#allocation5_spill]] %s2693_s5  ;;  %s2855_s6 = sadd.s32 4294967295, %s2705_s28   ;;  %s2705_s28 = sphi %s2840_s28, %s3461_s28   ;;  %s2701_s27 = sphi %s2838_s27, %s3463_s27   ;;  %s2697_s26 = sphi %s2836_s26, %s3465_s26   ;;  %s2693_s5 = sphi %s2834_s5, %s3464_s5  }
   0xf   : > { %3440 = sst [smem:[#allocation6_spill]] %s2701_s27  ;;  %s2431_s2 = sadd.s32 4294967294, %s2705_s28  }
  0x10   : > { %3441 = sst [smem:[#allocation7_spill]] %s2705_s28  ;;  %s2859_s29 = sadd.s32 1, %s2705_s28  }
  0x11   : > { %3442 = sst [smem:[#allocation8_spill]] %s2859_s29  ;;  %s553_s0 = sadd.s32 1, %s2701_s27 }
  0x12   : > { %s550_s7 = ssub.s32 %s2705_s28, %s2859_s29  ;;  %p563_p0 = scmp.ne.s32.totalorder %s2701_s27, %s2697_s26 }
  0x13   : > { %p551_p1 = scmp.eq.s32.totalorder %s550_s7, 0  ;;  %p564_p2 = scmp.eq.s32.totalorder %s2855_s6, 1 }
  0x14   : > { %p569_p3 = scmp.ne.s32.totalorder %s2697_s26, %s2693_s5  ;;  %p570_p4 = scmp.eq.s32.totalorder %s2431_s2, 1 }
  0x15   : > { %s2870_s30 = scalar_select %p551_p1, %s2701_s27, %s553_s0  }
  0x16   : > { %p2872_p5 = por %p564_p2, %p563_p0  ;;  %p2876_p6 = por %p570_p4, %p569_p3 }
  0x17   : > { %3443 = sst [smem:[#allocation9_spill]] %s2870_s30  ;;  %p2434_p7 = scmp.ge.s32.totalorder %s2705_s28, 1 }
  0x18   : > { %s3445_s25 = scalar_select %p2876_p6, 1, 0 }
  0x19   : > { %p665_p8 = scmp.lt.s32.totalorder %s2705_s28, 3 }
  0x1a   : > { %3446 = sst [smem:[#allocation10_spill]] %s3445_s25 }
  0x1b   : > { %p666_p9 = pnand %p2434_p7, %p665_p8 }
  0x1c   : > { %s3447_s1 = sld [smem:[#allocation12_spill]] (!%p666_p9)  ;;  %p730_p10 = scmp.lt.s32.totalorder (!%p666_p9), %s2855_s6, 1 }
  0x1d   : > { %669 = sbr.rel (%p666_p9) target bundleno = 2627 (0xa43), region = 116  ;;  %s3448_s30 = sld [smem:[#allocation11_spill]] (!%p666_p9) }
  0x1e   : > { %s3449_s28 = sld [smem:[#allocation13_spill]] (!%p666_p9)  ;;  %s2663_s25 = scalar_lea.hbm (!%p666_p9), %s3416_s24, 2 }
  0x1f   : > { %s3451_s2 = sld [smem:[#allocation14_spill]] (!%p666_p9) }
  0x20   : > { %s3452_s5 = sld [smem:[#allocation15_spill]] (!%p666_p9) }
  0x21   : > { %s3454_s4 = sld [smem:[#allocation17_spill]] (!%p666_p9) }
  0x22   : > { %v740_v0 = vld [vmem:[%s3447_s1] sm:$0xf]  ;;  %vm748_vm0 = vcmask 1043456   ;;  %v2439_v1 = vld [vmem:[%s3447_s1 + $0x4] sm:$0xf]  ;;  %s731_s27 = scalar_select %p730_p10, %s2855_s6, 1 }
  0x23   : > { %2436 = vmatpush.msk.msra.mxu0 %vm748_vm0, %v740_v0  ;;  %v2443_v2 = vld [vmem:[%s3447_s1 + $0x8] sm:$0xf]  ;;  %2440 = vmatpush.msk.msra.mxu1 %vm748_vm0, %v2439_v1  ;;  %v2447_v3 = vld [vmem:[%s3447_s1 + $0xc] sm:$0xf]  ;;  %v2451_v4 = vld [vmem:[%s3447_s1 + $0x10] sm:$0xf] }
  0x24   : > { %2444 = vmatpush.msk.msra.mxu2 %vm748_vm0, %v2443_v2  ;;  %2448 = vmatpush.msk.msra.mxu3 %vm748_vm0, %v2447_v3  ;;  %v2459_v5 = vld [vmem:[%s3447_s1 + $0x18] sm:$0xf]  ;;  %v2463_v6 = vld [vmem:[%s3447_s1 + $0x1c] sm:$0xf]  ;;  %v2455_v7 = vld [vmem:[%s3447_s1 + $0x14] sm:$0xf]  ;;  %s3450_s7 = smov %s3449_s28 }
  0x25   : > { %2452 = vmatpush.msk.msrb.mxu0 %vm748_vm0, %v2451_v4  ;;  %s2540_s8 = smul.u32 24, %s731_s27  ;;  %vm741_vm1 = vcmask 31744   ;;  %v2467_v8 = vld [vmem:[%s3447_s1 + $0x20] sm:$0xf]  ;;  %2456 = vmatpush.msk.msrb.mxu1 %vm748_vm0, %v2455_v7  ;;  %vm780_vm2 = vcmask 1046528   ;;  %vm820_vm3 = vcmask 1045504  }
  0x26   : > { %2460 = vmatpush.msk.msrb.mxu2 %vm748_vm0, %v2459_v5  ;;  %2464 = vmatpush.msk.msrb.mxu3 %vm748_vm0, %v2463_v6  ;;  %vm860_vm4 = vcmask 1044480   ;;  %vm939_vm5 = vcmask 1042432   ;;  %vm979_vm6 = vcmask 1041408   ;;  %vm1019_vm7 = vcmask 1040384   ;;  %v738_v49 = vld [vmem:[%s3449_s28] sm:$0xff]  ;;  %v739_v56 = vld [vmem:[%s3450_s7 + $0x8] sm:$0xff] }
  0x27   : > { %s734_s0 = scalar_lea.vmem %s3448_s30, %s2540_s8  ;;  %vm1091_vm8 = vcmask 60416   ;;  %vm1099_vm9 = vcmask 64516   ;;  %s3453_s8 = sld [smem:[#allocation16_spill]]  ;;  %vm1202_vm10 = vcmask 253952   ;;  %vm1198_vm11 = vcmask 261120  }
  0x28   : > { %v735_v9 = vld [vmem:[%s734_s0] sm:$0xff]  ;;  %v736_v10 = vld [vmem:[%s734_s0 + $0x8] sm:$0xff]  ;;  %v737_v15 = vld [vmem:[%s734_s0 + $0x10] sm:$0xff]  ;;  %s3455_s9 = sld [smem:[#allocation20_spill]] }
  0x29   : > { %2437 = vmatmul.msk.f32.vlgmr.msra.gmra.mxu0 %vm741_vm1, %v735_v9  ;;  %v781_v11 = vrot.slane %v735_v9, 1  ;;  %v782_v12 = vrot.slane %v736_v10, 1  ;;  %v821_v13 = vrot.slane %v735_v9, 2  ;;  %v822_v14 = vrot.slane %v736_v10, 2 }
  0x2a   : > { %v861_v16 = vrot.slane %v735_v9, 3  ;;  %v862_v17 = vrot.slane %v736_v10, 3  ;;  %2468 = vmatpush.msk.msra.mxu0 %vm748_vm0, %v2467_v8  ;;  %v784_v21 = vrot.slane %v737_v15, 1  ;;  %v824_v22 = vrot.slane %v737_v15, 2 }
  0x2b   : > { %v783_v18 = vsel %vm780_vm2, %v781_v11, %v782_v12  ;;  %v823_v19 = vsel %vm820_vm3, %v821_v13, %v822_v14  ;;  %v864_v23 = vrot.slane %v737_v15, 3  ;;  %v900_v27 = vrot.slane %v735_v9, 4 }
  0x2c   : > { %2441 = vmatmul.msk.f32.vlgmr.msra.gmra.mxu1 %vm741_vm1, %v783_v18  ;;  %2445 = vmatmul.msk.f32.vlgmr.msra.gmra.mxu2 %vm741_vm1, %v823_v19  ;;  %v863_v20 = vsel %vm860_vm4, %v861_v16, %v862_v17  ;;  %v785_v24 = vsel %vm780_vm2, %v782_v12, %v784_v21  ;;  %v825_v25 = vsel %vm820_vm3, %v822_v14, %v824_v22  ;;  %v901_v28 = vrot.slane %v736_v10, 4 }
  0x2d   : > { %2449 = vmatmul.msk.f32.vlgmr.msra.gmra.mxu3 %vm741_vm1, %v863_v20  ;;  %v865_v26 = vsel %vm860_vm4, %v862_v17, %v864_v23  ;;  %v940_v29 = vrot.slane %v735_v9, 5  ;;  %v941_v30 = vrot.slane %v736_v10, 5  ;;  %v980_v31 = vrot.slane %v735_v9, 6 }
  0x2e   : > { %v981_v32 = vrot.slane %v736_v10, 6  ;;  %v902_v33 = vsel %vm748_vm0, %v900_v27, %v901_v28  ;;  %v1020_v34 = vrot.slane %v735_v9, 7  ;;  %v1021_v35 = vrot.slane %v736_v10, 7  ;;  %v1156_v9 = vld [vmem:[%s3451_s2] sm:$0xf]  ;;  %s3457_s2 = sld [smem:[#allocation19_spill]] }
  0x2f   : > { %v942_v36 = vsel %vm939_vm5, %v940_v29, %v941_v30  ;;  %v903_v39 = vrot.slane %v737_v15, 4  ;;  %v943_v40 = vrot.slane %v737_v15, 5  ;;  %v983_v41 = vrot.slane %v737_v15, 6  ;;  %2471 = vmatpush.msk.msra.mxu1 %vm748_vm0, %v1156_v9 }
  0x30   : > { %v982_v37 = vsel %vm979_vm6, %v980_v31, %v981_v32  ;;  %v1022_v38 = vsel %vm1019_vm7, %v1020_v34, %v1021_v35  ;;  %v1023_v43 = vrot.slane %v737_v15, 7  ;;  %vm1591_vm3 = vcmask 64512  }
  0x31   : > { %2438 = vmatmul.msk.f32.gmra.mxu0 %vm741_vm1, %v736_v10  ;;  %v904_v42 = vsel %vm748_vm0, %v901_v28, %v903_v39  ;;  %v944_v44 = vsel %vm939_vm5, %v941_v30, %v943_v40  ;;  %v984_v45 = vsel %vm979_vm6, %v981_v32, %v983_v41  ;;  %vm1732_vm4 = vcmask 72704  }
  0x32   : > { %v1024_v46 = vsel %vm1019_vm7, %v1021_v35, %v1023_v43 }
  0x34   : > { %2442 = vmatmul.msk.f32.gmra.mxu1 %vm741_vm1, %v785_v24  ;;  %2446 = vmatmul.msk.f32.gmra.mxu2 %vm741_vm1, %v825_v25 }
  0x35   : > { %2450 = vmatmul.msk.f32.gmra.mxu3 %vm741_vm1, %v865_v26 }
  0x39   : > { %2453 = vmatmul.msk.f32.vlgmr.msrb.gmra.mxu0 %vm741_vm1, %v902_v33 }
  0x3c   : > { %2457 = vmatmul.msk.f32.vlgmr.msrb.gmra.mxu1 %vm741_vm1, %v942_v36  ;;  %2461 = vmatmul.msk.f32.vlgmr.msrb.gmra.mxu2 %vm741_vm1, %v982_v37 }
  0x3d   : > { %2465 = vmatmul.msk.f32.vlgmr.msrb.gmra.mxu3 %vm741_vm1, %v1022_v38 }
  0x41   : > { %2454 = vmatmul.msk.f32.gmra.mxu0 %vm741_vm1, %v904_v42 }
  0x44   : > { %2458 = vmatmul.msk.f32.gmra.mxu1 %vm741_vm1, %v944_v44  ;;  %2462 = vmatmul.msk.f32.gmra.mxu2 %vm741_vm1, %v984_v45 }
  0x45   : > { %2466 = vmatmul.msk.f32.gmra.mxu3 %vm741_vm1, %v1024_v46 }
  0x49   : > { %2469 = vmatmul.msk.f32.vlgmr.msra.gmra.mxu0 %vm741_vm1, %v736_v10 }
  0x51   : > { %2470 = vmatmul.msk.f32.gmra.mxu0 %vm741_vm1, %v737_v15 }
  0xa6   : > { %v769_v47 = vpop.f32.mrf.mxu0 }
  0xa7   : > { %v775_v51 = vadd.f32 %v769_v47, %v738_v49 }
  0xa9   : > { %v810_v48 = vpop.f32.mrf.mxu1 }
  0xaa   : > { %v816_v55 = vadd.f32 %v810_v48, %v775_v51 }
  0xae   : > { %v772_v50 = vpop.f32.mrf.mxu0 }
  0xaf   : > { %v850_v52 = vpop.f32.mrf.mxu2  ;;  %v776_v59 = vadd.f32 %v772_v50, %v739_v56  ;;  %v2583_v56 = vld [vmem:[%s3452_s5] ss:$0 sm:$0xff] }
  0xb0   : > { %v890_v53 = vpop.f32.mrf.mxu3  ;;  %v856_v57 = vadd.f32 %v850_v52, %v816_v55 }
  0xb1   : > { %v813_v54 = vpop.f32.mrf.mxu1 }
  0xb2   : > { %v896_v62 = vadd.f32 %v890_v53, %v856_v57  ;;  %v817_v0 = vadd.f32 %v813_v54, %v776_v59  ;;  %v1187_v59 = vld [vmem:[%s3453_s8] sm:$0x1]  ;;  %s3456_s8 = sld [smem:[#allocation18_spill]] }
  0xb6   : > { %v929_v58 = vpop.f32.mrf.mxu0 }
  0xb7   : > { %v853_v60 = vpop.f32.mrf.mxu2  ;;  %v935_v1 = vadd.f32 %v929_v58, %v896_v62  ;;  %v1192_v62 = vld [vmem:[%s3454_s4] sm:$0xff] }
  0xb8   : > { %v893_v61 = vpop.f32.mrf.mxu3  ;;  %v857_v2 = vadd.f32 %v853_v60, %v817_v0  ;;  %v1193_v60 = vld [vmem:[%s3454_s4 + $0x8] sm:$0x1] }
  0xb9   : > { %v969_v63 = vpop.f32.mrf.mxu1 }
  0xba   : > { %v975_v4 = vadd.f32 %v969_v63, %v935_v1  ;;  %v897_v7 = vadd.f32 %v893_v61, %v857_v2 }
  0xbe   : > { %v932_v3 = vpop.f32.mrf.mxu0 }
  0xbf   : > { %v1009_v5 = vpop.f32.mrf.mxu2  ;;  %v936_v10 = vadd.f32 %v932_v3, %v897_v7 }
  0xc0   : > { %v1049_v6 = vpop.f32.mrf.mxu3  ;;  %v1015_v8 = vadd.f32 %v1009_v5, %v975_v4  ;;  %v2707_v4 = vmov 32.0  }
  0xc1   : > { %v972_v11 = vpop.f32.mrf.mxu1  ;;  %2591 = vrcp.f32 %v2707_v4 }
  0xc2   : > { %v1055_v12 = vadd.f32 %v1049_v6, %v1015_v8  ;;  %v976_v14 = vadd.f32 %v972_v11, %v936_v10 }
  0xc6   : > { %v1081_v13 = vpop.f32.mrf.mxu0 }
  0xc7   : > { %v1087_v15 = vadd.f32 %v1081_v13, %v1055_v12  ;;  %v1012_v16 = vpop.f32.mrf.mxu2  ;;  %v2592_v5 = vpop.eup %2591 }
  0xc8   : > { %v1016_v18 = vadd.f32 %v1012_v16, %v976_v14  ;;  %v1052_v19 = vpop.f32.mrf.mxu3  ;;  %v1207_v6 = vmul.f32 32.0, %v2592_v5  ;;  %vm1211_vm12 = vweird.f32 %v2592_v5 }
  0xc9   : > { %v1089_v17 = vmax.f32 %v1087_v15, 0.0 }
  0xca   : > { %v1056_v24 = vadd.f32 %v1052_v19, %v1016_v18  ;;  %v1208_v7 = vsub.f32 1.0, %v1207_v6 }
  0xcb   : > { %v1092_v20 = vsel %vm1091_vm8, %v1089_v17, -inf  ;;  %v1100_v21 = vsel %vm1099_vm9, %v1089_v17, -inf }
  0xcc   : > { %v1093_v22 = vrot.slane %v1092_v20, 4  ;;  %v1101_v23 = vrot.slane %v1100_v21, 4  ;;  %v1209_v8 = vmul.f32 %v2592_v5, %v1208_v7 }
  0xce   : > { %v1094_v25 = vmax.f32 %v1092_v20, %v1093_v22  ;;  %v1102_v26 = vmax.f32 %v1100_v21, %v1101_v23  ;;  %v1084_v27 = vpop.f32.mrf.mxu0  ;;  %v1210_v9 = vadd.f32 %v2592_v5, %v1209_v8  ;;  %v1264_v21 = vld [vmem:[%s3455_s9 + $0x18] sm:$0xff] }
  0xcf   : > { %v1088_v28 = vadd.f32 %v1084_v27, %v1056_v24  ;;  %v1268_v22 = vld [vmem:[%s3455_s9 + $0x38] sm:$0xff]  ;;  %1295 = vmatpush.msra.mxu2 %v1264_v21  ;;  %v1271_v27 = vld [vmem:[%s3455_s9 + $0x50] sm:$0xff] }
  0xd0   : > { %v1095_v29 = vrot.slane %v1094_v25, 2  ;;  %v1103_v30 = vrot.slane %v1102_v26, 2  ;;  %v2994_v10 = vsel %vm1211_vm12, %v2592_v5, %v1210_v9  ;;  %v1272_v23 = vld [vmem:[%s3455_s9 + $0x58] sm:$0xff]  ;;  %1318 = vmatpush.msra.mxu3 %v1268_v22  ;;  %v2584_v9 = vld [vmem:[%s3456_s8] ss:$0 sm:$0xff]  ;;  %v1485_v22 = vld [vmem:[%s3403_s11 + $0x10] sm:$0xff] }
  0xd1   : > { %v1090_v31 = vmax.f32 %v1088_v28, 0.0  ;;  %v1276_v24 = vld [vmem:[%s3455_s9 + $0x78] sm:$0xff]  ;;  %1341 = vmatpush.msrb.mxu1 %v1272_v23  ;;  %v1275_v28 = vld [vmem:[%s3455_s9 + $0x70] sm:$0xff]  ;;  %s728_s8 = sand.u32 1, %s2697_s26  }
  0xd2   : > { %v1096_v32 = vmax.f32 %v1094_v25, %v1095_v29  ;;  %v1104_v33 = vmax.f32 %v1102_v26, %v1103_v30  ;;  %1364 = vmatpush.msrb.mxu0 %v1276_v24  ;;  %v1263_v25 = vld [vmem:[%s3455_s9 + $0x10] sm:$0xff]  ;;  %v1262_v29 = vld [vmem:[%s3455_s9 + $0x8] sm:$0xff]  ;;  %v1490_v21 = vld [vmem:[%s3403_s11 + $0x38] sm:$0xff]  ;;  %s729_s0 = scalar_lea.vmem [#allocation2], %s728_s8  ;;  %s2364_s27 = scalar_lea.sflag [#allocation3], %s728_s8 }
  0xd3   : > { %v1107_v34 = vsel %vm1091_vm8, %v1090_v31, -inf  ;;  %v1114_v35 = vsel %vm1099_vm9, %v1090_v31, -inf  ;;  %v1267_v26 = vld [vmem:[%s3455_s9 + $0x30] sm:$0xff]  ;;  %1296 = vmatpush.msra.mxu2 %v1263_v25  ;;  %1342 = vmatpush.msrb.mxu1 %v1271_v27  ;;  %v1266_v30 = vld [vmem:[%s3455_s9 + $0x28] sm:$0xff]  ;;  %s2374_s5 = sshll.u32 %s729_s0, 4  ;;  %s2375_s5 = int_to_ptr.vmem [resolvable:$true] %s2374_s5 }
  0xd4   : > { %v1108_v36 = vrot.slane %v1107_v34, 4  ;;  %v1115_v37 = vrot.slane %v1114_v35, 4  ;;  %v1097_v40 = vrot.slane %v1096_v32, 1  ;;  %v1105_v41 = vrot.slane %v1104_v33, 1  ;;  %1319 = vmatpush.msra.mxu3 %v1267_v26  ;;  %1365 = vmatpush.msrb.mxu0 %v1275_v28  ;;  %v1270_v31 = vld [vmem:[%s3455_s9 + $0x48] sm:$0xff]  ;;  %v1489_v23 = vld [vmem:[%s3403_s11 + $0x30] sm:$0xff] }
  0xd5   : > { %1297 = vmatpush.msra.mxu2 %v1262_v29  ;;  %1343 = vmatpush.msrb.mxu1 %v1270_v31  ;;  %v1493_v25 = vld [vmem:[%s3403_s11 + $0x50] sm:$0xff]  ;;  %v1484_v27 = vld [vmem:[%s3403_s11 + $0x8] sm:$0xff] }
  0xd6   : > { %v1109_v38 = vmax.f32 %v1107_v34, %v1108_v36  ;;  %v1116_v39 = vmax.f32 %v1114_v35, %v1115_v37  ;;  %v1098_v46 = vmax.f32 %v1096_v32, %v1097_v40  ;;  %v1106_v47 = vmax.f32 %v1104_v33, %v1105_v41  ;;  %1320 = vmatpush.msra.mxu3 %v1266_v30  ;;  %v1274_v32 = vld [vmem:[%s3455_s9 + $0x68] sm:$0xff]  ;;  %v1261_v33 = vld [vmem:[%s3455_s9] sm:$0xff]  ;;  %v1497_v26 = vld [vmem:[%s3403_s11 + $0x70] sm:$0xff] }
  0xd7   : > { %1366 = vmatpush.msrb.mxu0 %v1274_v32  ;;  %v1265_v34 = vld [vmem:[%s3455_s9 + $0x20] sm:$0xff]  ;;  %1298 = vmatpush.msra.mxu2 %v1261_v33  ;;  %v1488_v28 = vld [vmem:[%s3403_s11 + $0x28] sm:$0xff] }
  0xd8   : > { %v1110_v42 = vrot.slane %v1109_v38, 2  ;;  %v1117_v43 = vrot.slane %v1116_v39, 2  ;;  %v1121_v52 = vsel %vm1019_vm7, %v1098_v46, %v1106_v47  ;;  %v1269_v35 = vld [vmem:[%s3455_s9 + $0x40] sm:$0xff]  ;;  %1321 = vmatpush.msra.mxu3 %v1265_v34  ;;  %v1390_v46 = vld [vmem:[%s3402_s10 + $0x78] sm:$0xff]  ;;  %v1377_v47 = vld [vmem:[%s3402_s10 + $0x10] sm:$0xff] }
  0xd9   : > { %v1273_v36 = vld [vmem:[%s3455_s9 + $0x60] sm:$0xff]  ;;  %1344 = vmatpush.msrb.mxu1 %v1269_v35  ;;  %v1492_v29 = vld [vmem:[%s3403_s11 + $0x48] sm:$0xff] }
  0xda   : > { %v1111_v44 = vmax.f32 %v1109_v38, %v1110_v42  ;;  %v1118_v45 = vmax.f32 %v1116_v39, %v1117_v43  ;;  %1367 = vmatpush.msrb.mxu0 %v1273_v36  ;;  %v1378_v43 = vld [vmem:[%s3402_s10 + $0x18] sm:$0xff]  ;;  %v1496_v30 = vld [vmem:[%s3403_s11 + $0x68] sm:$0xff]  ;;  %v1483_v32 = vld [vmem:[%s3403_s11] sm:$0xff] }
  0xdb   : > { %1403 = vmatpush.msrb.mxu2 %v1378_v43  ;;  %v1487_v33 = vld [vmem:[%s3403_s11 + $0x20] sm:$0xff] }
  0xdc   : > { %v1112_v48 = vrot.slane %v1111_v44, 1  ;;  %v1119_v49 = vrot.slane %v1118_v45, 1  ;;  %1472 = vmatpush.msra.mxu0 %v1390_v46  ;;  %v1491_v34 = vld [vmem:[%s3403_s11 + $0x40] sm:$0xff] }
  0xdd   : > { %1404 = vmatpush.msrb.mxu2 %v1377_v47  ;;  %v1495_v35 = vld [vmem:[%s3403_s11 + $0x60] sm:$0xff] }
  0xde   : > { %v1113_v50 = vmax.f32 %v1111_v44, %v1112_v48  ;;  %v1120_v51 = vmax.f32 %v1118_v45, %v1119_v49  ;;  %v1382_v44 = vld [vmem:[%s3402_s10 + $0x38] sm:$0xff]  ;;  %v1381_v48 = vld [vmem:[%s3402_s10 + $0x30] sm:$0xff] }
  0xdf   : > { %v1386_v45 = vld [vmem:[%s3402_s10 + $0x58] sm:$0xff]  ;;  %1426 = vmatpush.msrb.mxu3 %v1382_v44  ;;  %v1385_v49 = vld [vmem:[%s3402_s10 + $0x50] sm:$0xff] }
  0xe0   : > { %v1122_v53 = vsel %vm979_vm6, %v1121_v52, %v1113_v50  ;;  %v1389_v50 = vld [vmem:[%s3402_s10 + $0x70] sm:$0xff]  ;;  %v1380_v52 = vld [vmem:[%s3402_s10 + $0x28] sm:$0xff] }
  0xe1   : > { %v1123_v54 = vsel %vm939_vm5, %v1122_v53, %v1120_v51  ;;  %v1376_v51 = vld [vmem:[%s3402_s10 + $0x8] sm:$0xff]  ;;  %1427 = vmatpush.msrb.mxu3 %v1381_v48  ;;  %1473 = vmatpush.msra.mxu0 %v1389_v50  ;;  %vm1736_vm5 = vcmask 65536  }
  0xe2   : > { %1124 = vxpose.xlu0.b32.start.end [1/1] (short) (narrow) %v1123_v54, 8  ;;  %v1384_v53 = vld [vmem:[%s3402_s10 + $0x48] sm:$0xff]  ;;  %1405 = vmatpush.msrb.mxu2 %v1376_v51 }
  0xe3   : > { %v1388_v54 = vld [vmem:[%s3402_s10 + $0x68] sm:$0xff]  ;;  %1428 = vmatpush.msrb.mxu3 %v1380_v52 }
  0xe4   : > { %1474 = vmatpush.msra.mxu0 %v1388_v54 }
 0x186   : > { %v1140_v55 = vpop.trf.xlu0 }
 0x187   : > { %2472 = vmatmul.msk.f32.vlgmr.msra.gmra.mxu1 %vm741_vm1, %v1140_v55 }
 0x188   : > { %1449 = vmatpush.msra.mxu1 %v1386_v45 }
 0x18a   : > { %1450 = vmatpush.msra.mxu1 %v1385_v49 }
 0x18c   : > { %1451 = vmatpush.msra.mxu1 %v1384_v53 }
 0x204   : > { %v1184_v57 = vpop.f32.mrf.mxu1 }
 0x205   : > { %v1185_v58 = vadd.f32 %v2583_v56, %v1184_v57  ;;  %v1375_v56 = vld [vmem:[%s3402_s10] sm:$0xff] }
 0x206   : > { %v1379_v57 = vld [vmem:[%s3402_s10 + $0x20] sm:$0xff]  ;;  %1406 = vmatpush.msrb.mxu2 %v1375_v56 }
 0x207   : > { %v1189_v61 = vrot.slane %v1185_v58, 7  ;;  %1429 = vmatpush.msrb.mxu3 %v1379_v57 }
 0x209   : > { %v1191_v63 = vsel %vm1019_vm7, %v1187_v59, %v1189_v61  ;;  %v2986_v0 = vadd.f32 %v1193_v60, %v1189_v61  ;;  %v1383_v60 = vld [vmem:[%s3402_s10 + $0x40] sm:$0xff] }
 0x20a   : > { %v2988_v1 = vadd.f32 %v1192_v62, %v1191_v63  ;;  %v1387_v61 = vld [vmem:[%s3402_s10 + $0x60] sm:$0xff]  ;;  %1452 = vmatpush.msra.mxu1 %v1383_v60 }
 0x20b   : > { %v1203_v2 = vsel %vm1202_vm10, %v2986_v0, 0.0  ;;  %1475 = vmatpush.msra.mxu0 %v1387_v61 }
 0x20c   : > { %1204 = vadd.xlane.f32.xlu1 %v1203_v2  ;;  %v1199_v3 = vsel %vm1198_vm11, %v2988_v1, 0.0 }
 0x20d   : > { %1200 = vadd.xlane.f32.xlu0 %v1199_v3 }
 0x27f   : > { %v1205_v11 = vpop.xlane.xlu1 %1204 }
 0x280   : > { %v1214_v12 = vmul.f32 %v2994_v10, %v1205_v11  ;;  %v1201_v13 = vpop.xlane.xlu0 %1200 }
 0x281   : > { %v1213_v14 = vmul.f32 %v2994_v10, %v1201_v13 }
 0x282   : > { %v2999_v15 = vsub.f32 %v2986_v0, %v1214_v12  ;;  %v2585_v12 = vld [vmem:[%s3457_s2] ss:$0 sm:$0xff]  ;;  %s2372_s2 = scalar_lea.hbm %s3416_s24, %s2855_s6 }
 0x283   : > { %v3002_v16 = vsub.f32 %v2988_v1, %v1213_v14  ;;  %s2376_s4 = sshll.u32 %s2372_s2, 4  ;;  %s2377_s4 = int_to_ptr.hbm [resolvable:$true] %s2376_s4 }
 0x284   : > { %v1218_v17 = vmul.f32 %v2999_v15, %v2999_v15  ;;  %s2657_s28 = sshra.s32 %s2377_s4, 4  ;;  %s2658_s28 = int_to_ptr.hbm [resolvable:$true] %s2657_s28 }
 0x285   : > { %v1217_v18 = vmul.f32 %v3002_v16, %v3002_v16  ;;  %s2659_s7 = scalar_lea.hbm %s2658_s28, 1  ;;  %p2664_p0 = scmp.lt.s32.totalorder %s2658_s28, %s3416_s24 }
 0x286   : > { %v1222_v19 = vsel %vm1202_vm10, %v1218_v17, 0.0  ;;  %p2660_p11 = scmp.ne.s32.totalorder %s2658_s28, %s2659_s7  ;;  %p2665_p1 = scmp.lt.s32.totalorder %s2663_s25, %s2659_s7 }
 0x287   : > { %1223 = vadd.xlane.f32.xlu2 %v1222_v19  ;;  %v1219_v20 = vsel %vm1198_vm11, %v1217_v18, 0.0 }
 0x288   : > { %1220 = vadd.xlane.f32.xlu1 %v1219_v20  ;;  %v1486_v20 = vld [vmem:[%s3403_s11 + $0x18] sm:$0xff]  ;;  %p2661_p12 = pnand %p2660_p11, %p2872_p5  ;;  %p2666_p2 = por %p2665_p1, %p2664_p0 }
 0x28a   : > { %p2662_p13 = pneg %p2661_p12 }
 0x28c   : > { %p2667_p3 = pnand %p2666_p2, %p2662_p13 }
 0x2fa   : > { %v1224_v37 = vpop.xlane.xlu2 %1223 }
 0x2fb   : > { %v1226_v38 = vmul.f32 %v1224_v37, %v2994_v10  ;;  %v1221_v39 = vpop.xlane.xlu1 %1220 }
 0x2fc   : > { %v1225_v40 = vmul.f32 %v1221_v39, %v2994_v10 }
 0x2fd   : > { %v1228_v41 = vadd.f32 1e-05, %v1226_v38 }
 0x2fe   : > { %v1227_v42 = vadd.f32 1e-05, %v1225_v40 }
 0x2ff   : > { %2593 = vrsqrt.f32 %v1228_v41  ;;  %vm1245_vm1 = vweird.f32 %v1228_v41 }
 0x300   : > { %2595 = vrsqrt.f32 %v1227_v42  ;;  %vm1235_vm15 = vweird.f32 %v1227_v42 }
 0x305   : > { %v2594_v55 = vpop.eup %2593 }
 0x306   : > { %v2596_v58 = vpop.eup %2595  ;;  %v1240_v59 = vmul.f32 %v2594_v55, %v1228_v41  ;;  %vm1246_vm14 = vweird.f32 %v2594_v55 }
 0x307   : > { %v1230_v62 = vmul.f32 %v2596_v58, %v1227_v42  ;;  %vm1236_vm13 = vweird.f32 %v2596_v58  ;;  %vm1247_vm2 = vmor %vm1245_vm1, %vm1246_vm14 }
 0x308   : > { %v1241_v63 = vmul.f32 %v2594_v55, %v1240_v59  ;;  %vm1237_vm0 = vmor %vm1235_vm15, %vm1236_vm13 }
 0x309   : > { %v1231_v2 = vmul.f32 %v2596_v58, %v1230_v62 }
 0x30a   : > { %v1242_v3 = vmul.f32 0.5, %v1241_v63 }
 0x30b   : > { %v1232_v4 = vmul.f32 0.5, %v1231_v2 }
 0x30c   : > { %v1243_v5 = vsub.f32 1.5, %v1242_v3 }
 0x30d   : > { %v1233_v6 = vsub.f32 1.5, %v1232_v4 }
 0x30e   : > { %v1244_v7 = vmul.f32 %v2594_v55, %v1243_v5 }
 0x30f   : > { %v1234_v8 = vmul.f32 %v2596_v58, %v1233_v6 }
 0x310   : > { %v1248_v14 = vsel %vm1247_vm2, %v2594_v55, %v1244_v7 }
 0x311   : > { %v1238_v11 = vsel %vm1237_vm0, %v2596_v58, %v1234_v8  ;;  %v1250_v18 = vmul.f32 %v1248_v14, %v2999_v15  ;;  %v1498_v15 = vld [vmem:[%s3403_s11 + $0x78] sm:$0xff] }
 0x312   : > { %v1249_v13 = vmul.f32 %v1238_v11, %v3002_v16  ;;  %v1494_v16 = vld [vmem:[%s3403_s11 + $0x58] sm:$0xff] }
 0x313   : > { %v1255_v24 = vmul.f32 %v2584_v9, %v1250_v18 }
 0x314   : > { %v1254_v17 = vmul.f32 %v2584_v9, %v1249_v13 }
 0x315   : > { %v1260_v31 = vadd.f32 %v2585_v12, %v1255_v24 }
 0x316   : > { %v1259_v19 = vadd.f32 %v2585_v12, %v1254_v17 }
 0x318   : > { %2473 = vmatmul.msk.f32.vlgmr.msra.gmra.mxu2 %vm1198_vm11, %v1259_v19  ;;  %2475 = vmatmul.msk.f32.vlgmr.msra.gmra.mxu3 %vm1198_vm11, %v1259_v19 }
 0x319   : > { %2477 = vmatmul.msk.f32.vlgmr.msrb.gmra.mxu1 %vm1198_vm11, %v1259_v19  ;;  %2479 = vmatmul.msk.f32.vlgmr.msrb.gmra.mxu0 %vm1198_vm11, %v1259_v19 }
 0x31a   : > { %1511 = vmatpush.msra.mxu2 %v1486_v20  ;;  %1534 = vmatpush.msra.mxu3 %v1490_v21 }
 0x31b   : > { %1557 = vmatpush.msrb.mxu1 %v1494_v16  ;;  %1580 = vmatpush.msrb.mxu0 %v1498_v15 }
 0x31c   : > { %1512 = vmatpush.msra.mxu2 %v1485_v22  ;;  %1535 = vmatpush.msra.mxu3 %v1489_v23 }
 0x31d   : > { %1558 = vmatpush.msrb.mxu1 %v1493_v25  ;;  %1581 = vmatpush.msrb.mxu0 %v1497_v26 }
 0x31e   : > { %1513 = vmatpush.msra.mxu2 %v1484_v27  ;;  %1536 = vmatpush.msra.mxu3 %v1488_v28 }
 0x31f   : > { %1559 = vmatpush.msrb.mxu1 %v1492_v29  ;;  %1582 = vmatpush.msrb.mxu0 %v1496_v30 }
 0x320   : > { %2474 = vmatmul.msk.f32.gmra.mxu2 %vm1198_vm11, %v1260_v31  ;;  %2476 = vmatmul.msk.f32.gmra.mxu3 %vm1198_vm11, %v1260_v31 }
 0x321   : > { %2478 = vmatmul.msk.f32.gmra.mxu1 %vm1198_vm11, %v1260_v31  ;;  %2480 = vmatmul.msk.f32.gmra.mxu0 %vm1198_vm11, %v1260_v31 }
 0x322   : > { %1514 = vmatpush.msra.mxu2 %v1483_v32  ;;  %1537 = vmatpush.msra.mxu3 %v1487_v33 }
 0x323   : > { %1560 = vmatpush.msrb.mxu1 %v1491_v34  ;;  %1583 = vmatpush.msrb.mxu0 %v1495_v35 }
 0x328   : > { %2481 = vmatmul.msk.f32.vlgmr.msrb.gmra.mxu2 %vm1198_vm11, %v1259_v19  ;;  %2483 = vmatmul.msk.f32.vlgmr.msrb.gmra.mxu3 %vm1198_vm11, %v1259_v19 }
 0x329   : > { %2485 = vmatmul.msk.f32.vlgmr.msra.gmra.mxu1 %vm1198_vm11, %v1259_v19  ;;  %2487 = vmatmul.msk.f32.vlgmr.msra.gmra.mxu0 %vm1198_vm11, %v1259_v19 }
 0x330   : > { %2482 = vmatmul.msk.f32.gmra.mxu2 %vm1198_vm11, %v1260_v31  ;;  %2484 = vmatmul.msk.f32.gmra.mxu3 %vm1198_vm11, %v1260_v31 }
 0x331   : > { %2486 = vmatmul.msk.f32.gmra.mxu1 %vm1198_vm11, %v1260_v31  ;;  %2488 = vmatmul.msk.f32.gmra.mxu0 %vm1198_vm11, %v1260_v31 }
 0x338   : > { %2489 = vmatmul.msk.f32.vlgmr.msra.gmra.mxu2 %vm1198_vm11, %v1259_v19  ;;  %2491 = vmatmul.msk.f32.vlgmr.msra.gmra.mxu3 %vm1198_vm11, %v1259_v19 }
 0x339   : > { %2493 = vmatmul.msk.f32.vlgmr.msrb.gmra.mxu1 %vm1198_vm11, %v1259_v19  ;;  %2495 = vmatmul.msk.f32.vlgmr.msrb.gmra.mxu0 %vm1198_vm11, %v1259_v19 }
 0x340   : > { %2490 = vmatmul.msk.f32.gmra.mxu2 %vm1198_vm11, %v1260_v31  ;;  %2492 = vmatmul.msk.f32.gmra.mxu3 %vm1198_vm11, %v1260_v31 }
 0x341   : > { %2494 = vmatmul.msk.f32.gmra.mxu1 %vm1198_vm11, %v1260_v31  ;;  %2496 = vmatmul.msk.f32.gmra.mxu0 %vm1198_vm11, %v1260_v31 }
 0x396   : > { %v1346_v36 = vpop.f32.mrf.mxu1  ;;  %v1369_v37 = vpop.f32.mrf.mxu0 }
 0x39b   : > { %v1300_v38 = vpop.f32.mrf.mxu2  ;;  %v1323_v39 = vpop.f32.mrf.mxu3 }
 0x39e   : > { %v1349_v40 = vpop.f32.mrf.mxu1  ;;  %v1372_v41 = vpop.f32.mrf.mxu0 }
 0x3a3   : > { %v1303_v42 = vpop.f32.mrf.mxu2  ;;  %v1326_v43 = vpop.f32.mrf.mxu3 }
 0x3a6   : > { %v1454_v44 = vpop.f32.mrf.mxu1  ;;  %v1477_v45 = vpop.f32.mrf.mxu0 }
 0x3ab   : > { %v1408_v46 = vpop.f32.mrf.mxu2  ;;  %v1431_v47 = vpop.f32.mrf.mxu3 }
 0x3ae   : > { %v1457_v48 = vpop.f32.mrf.mxu1  ;;  %v1480_v49 = vpop.f32.mrf.mxu0 }
 0x3af   : > { %2505 = vmatpush.xpose.msk.msra.mxu1 %vm1591_vm3, %v1457_v48  ;;  %2509 = vmatpush.xpose.msk.msra.mxu0 %vm1591_vm3, %v1480_v49 }
 0x3b3   : > { %2506 = vmatpush.xpose.msk.msra.mxu1 %vm1591_vm3, %v1454_v44  ;;  %2510 = vmatpush.xpose.msk.msra.mxu0 %vm1591_vm3, %v1477_v45  ;;  %v1411_v50 = vpop.f32.mrf.mxu2  ;;  %v1434_v51 = vpop.f32.mrf.mxu3 }
 0x3b4   : > { %2497 = vmatpush.xpose.msk.msrb.mxu2 %vm1591_vm3, %v1411_v50  ;;  %2501 = vmatpush.xpose.msk.msrb.mxu3 %vm1591_vm3, %v1434_v51 }
 0x3b6   : > { %v1562_v52 = vpop.f32.mrf.mxu1  ;;  %v1585_v53 = vpop.f32.mrf.mxu0  ;;  %2507 = vmatmul.msk.f32.vlgmr.msra.gmra.mxu1 %vm1591_vm3, %v1346_v36  ;;  %2511 = vmatmul.msk.f32.vlgmr.msra.gmra.mxu0 %vm1591_vm3, %v1369_v37 }
 0x3b8   : > { %2498 = vmatpush.xpose.msk.msrb.mxu2 %vm1591_vm3, %v1408_v46  ;;  %2502 = vmatpush.xpose.msk.msrb.mxu3 %vm1591_vm3, %v1431_v47 }
 0x3bb   : > { %v1516_v54 = vpop.f32.mrf.mxu2  ;;  %v1539_v55 = vpop.f32.mrf.mxu3  ;;  %2499 = vmatmul.msk.f32.vlgmr.msrb.gmra.mxu2 %vm1591_vm3, %v1300_v38  ;;  %2503 = vmatmul.msk.f32.vlgmr.msrb.gmra.mxu3 %vm1591_vm3, %v1323_v39 }
 0x3be   : > { %v1565_v56 = vpop.f32.mrf.mxu1  ;;  %v1588_v57 = vpop.f32.mrf.mxu0  ;;  %2508 = vmatmul.msk.f32.gmra.mxu1 %vm1591_vm3, %v1349_v40  ;;  %2512 = vmatmul.msk.f32.gmra.mxu0 %vm1591_vm3, %v1372_v41 }
 0x3bf   : > { %2519 = vmatpush.msk.msrb.mxu1 %vm1019_vm7, %v1565_v56  ;;  %2522 = vmatpush.msk.msrb.mxu0 %vm1019_vm7, %v1588_v57 }
 0x3c1   : > { %1910 = vmatpush.msrb.mxu1 %v1562_v52  ;;  %1942 = vmatpush.msrb.mxu0 %v1585_v53 }
 0x3c3   : > { %v1519_v58 = vpop.f32.mrf.mxu2  ;;  %v1542_v59 = vpop.f32.mrf.mxu3  ;;  %2500 = vmatmul.msk.f32.gmra.mxu2 %vm1591_vm3, %v1303_v42  ;;  %2504 = vmatmul.msk.f32.gmra.mxu3 %vm1591_vm3, %v1326_v43 }
 0x3c4   : > { %2513 = vmatpush.msk.msra.mxu2 %vm1019_vm7, %v1519_v58  ;;  %2516 = vmatpush.msk.msra.mxu3 %vm1019_vm7, %v1542_v59 }
 0x3c6   : > { %1846 = vmatpush.msra.mxu2 %v1516_v54  ;;  %1878 = vmatpush.msra.mxu3 %v1539_v55 }
 0x433   : > { %v1691_v2 = vpop.f32.mrf.mxu1  ;;  %v1726_v3 = vpop.f32.mrf.mxu0 }
 0x434   : > { %v1752_v4 = vsel %vm1732_vm4, %v1726_v3, -inf  ;;  %v1746_v5 = vsel %vm1732_vm4, %v1691_v2, -inf }
 0x43b   : > { %v1729_v31 = vpop.f32.mrf.mxu0  ;;  %v1694_v32 = vpop.f32.mrf.mxu1 }
 0x43c   : > { %v1755_v33 = vsel %vm1736_vm5, %v1729_v31, -inf  ;;  %v1749_v34 = vsel %vm1736_vm5, %v1694_v32, -inf }
 0x43e   : > { %v1621_v60 = vpop.f32.mrf.mxu2  ;;  %v1656_v61 = vpop.f32.mrf.mxu3 }
 0x43f   : > { %v1740_v62 = vsel %vm1732_vm4, %v1656_v61, -inf  ;;  %v1733_v63 = vsel %vm1732_vm4, %v1621_v60, -inf }
 0x440   : > { %1741 = vmax.xlane.f32.xlu1 %v1740_v62  ;;  %1734 = vmax.xlane.f32.xlu2 %v1733_v63 }
 0x446   : > { %v1659_v27 = vpop.f32.mrf.mxu3  ;;  %v1624_v28 = vpop.f32.mrf.mxu2 }
 0x447   : > { %v1743_v29 = vsel %vm1736_vm5, %v1659_v27, -inf  ;;  %v1737_v30 = vsel %vm1736_vm5, %v1624_v28, -inf }
 0x448   : > { %1753 = vmax.xlane.f32.xlu1 %v1752_v4  ;;  %1747 = vmax.xlane.f32.xlu2 %v1746_v5  ;;  %v1950_v5 = vld [vmem:[%s3404_s12] sm:$0xff] }
 0x449   : > { %1975 = vmatpush.msrb.mxu2 %v1950_v5 }
 0x4b3   : > { %v1742_v6 = vpop.xlane.xlu1 %1741  ;;  %v1735_v7 = vpop.xlane.xlu2 %1734 }
 0x4b4   : > { %v1760_v8 = vsub.f32 %v1656_v61, %v1742_v6  ;;  %v1758_v9 = vsub.f32 %v1621_v60, %v1735_v7  ;;  %v1951_v6 = vld [vmem:[%s3404_s12 + $0x8] sm:$0xff]  ;;  %v1952_v7 = vld [vmem:[%s3404_s12 + $0x10] sm:$0xff] }
 0x4b5   : > { %2004 = vmatpush.msrb.mxu3 %v1951_v6  ;;  %2033 = vmatpush.msra.mxu1 %v1952_v7 }
 0x4b6   : > { %v1770_v11 = vmul.f32 1.442695, %v1760_v8  ;;  %v1766_v12 = vmul.f32 1.442695, %v1758_v9  ;;  %v1953_v8 = vld [vmem:[%s3404_s12 + $0x18] sm:$0xff] }
 0x4b7   : > { %2062 = vmatpush.msra.mxu0 %v1953_v8 }
 0x4b8   : > { %2597 = vpow2.f32 %v1770_v11 }
 0x4b9   : > { %2599 = vpow2.f32 %v1766_v12 }
 0x4bb   : > { %v1754_v13 = vpop.xlane.xlu1 %1753  ;;  %v1748_v14 = vpop.xlane.xlu2 %1747 }
 0x4bc   : > { %v1764_v17 = vsub.f32 %v1726_v3, %v1754_v13  ;;  %v1762_v18 = vsub.f32 %v1691_v2, %v1748_v14 }
 0x4be   : > { %v2598_v19 = vpop.eup %2597  ;;  %v1778_v20 = vmul.f32 1.442695, %v1764_v17  ;;  %v1774_v21 = vmul.f32 1.442695, %v1762_v18 }
 0x4bf   : > { %v2600_v16 = vpop.eup %2599  ;;  %v1788_v15 = vsel %vm1732_vm4, %v2598_v19, 0.0 }
 0x4c0   : > { %2601 = vpow2.f32 %v1778_v20  ;;  %1789 = vadd.xlane.f32.xlu1 %v1788_v15  ;;  %v1782_v22 = vsel %vm1732_vm4, %v2600_v16, 0.0 }
 0x4c1   : > { %2603 = vpow2.f32 %v1774_v21  ;;  %1783 = vadd.xlane.f32.xlu2 %v1782_v22 }
 0x4c6   : > { %v2602_v23 = vpop.eup %2601 }
 0x4c7   : > { %v2604_v24 = vpop.eup %2603  ;;  %v1800_v25 = vsel %vm1732_vm4, %v2602_v23, 0.0 }
 0x4c8   : > { %1801 = vadd.xlane.f32.xlu1 %v1800_v25  ;;  %v1794_v26 = vsel %vm1732_vm4, %v2604_v24, 0.0 }
 0x4c9   : > { %1795 = vadd.xlane.f32.xlu2 %v1794_v26 }
 0x4d0   : > { %1744 = vmax.xlane.f32.xlu1 %v1743_v29 }
 0x4d1   : > { %1738 = vmax.xlane.f32.xlu2 %v1737_v30 }
 0x4d8   : > { %1756 = vmax.xlane.f32.xlu1 %v1755_v33 }
 0x4d9   : > { %1750 = vmax.xlane.f32.xlu2 %v1749_v34 }
 0x533   : > { %v1790_v35 = vpop.xlane.xlu1 %1789 }
 0x534   : > { %2605 = vrcp.f32 %v1790_v35  ;;  %v1784_v36 = vpop.xlane.xlu2 %1783 }
 0x535   : > { %2607 = vrcp.f32 %v1784_v36 }
 0x53a   : > { %v2606_v37 = vpop.eup %2605 }
 0x53b   : > { %v2608_v38 = vpop.eup %2607  ;;  %v1816_v39 = vmul.f32 %v2606_v37, %v2598_v19  ;;  %v1802_v40 = vpop.xlane.xlu1 %1801 }
 0x53c   : > { %v1814_v41 = vmul.f32 %v2608_v38, %v2600_v16  ;;  %2609 = vrcp.f32 %v1802_v40  ;;  %v1796_v42 = vpop.xlane.xlu2 %1795 }
 0x53d   : > { %2611 = vrcp.f32 %v1796_v42  ;;  %2517 = vmatmul.msk.f32.vlgmr.msra.gmra.mxu3 %vm1732_vm4, %v1816_v39 }
 0x53e   : > { %2514 = vmatmul.msk.f32.vlgmr.msra.gmra.mxu2 %vm1732_vm4, %v1814_v41  ;;  %v2586_v41 = vld [vmem:[%s3405_s13] ss:$0 sm:$0xff] }
 0x542   : > { %v2610_v43 = vpop.eup %2609 }
 0x543   : > { %v2612_v44 = vpop.eup %2611  ;;  %v1820_v45 = vmul.f32 %v2610_v43, %v2602_v23  ;;  %v1745_v46 = vpop.xlane.xlu1 %1744 }
 0x544   : > { %v1818_v47 = vmul.f32 %v2612_v44, %v2604_v24  ;;  %v1761_v48 = vsub.f32 %v1659_v27, %v1745_v46  ;;  %v1739_v49 = vpop.xlane.xlu2 %1738 }
 0x545   : > { %v1759_v50 = vsub.f32 %v1624_v28, %v1739_v49  ;;  %2523 = vmatmul.msk.f32.vlgmr.msrb.gmra.mxu0 %vm1732_vm4, %v1820_v45 }
 0x546   : > { %v1772_v51 = vmul.f32 1.442695, %v1761_v48  ;;  %2520 = vmatmul.msk.f32.vlgmr.msrb.gmra.mxu1 %vm1732_vm4, %v1818_v47 }
 0x547   : > { %v1768_v52 = vmul.f32 1.442695, %v1759_v50 }
 0x548   : > { %2613 = vpow2.f32 %v1772_v51 }
 0x549   : > { %2615 = vpow2.f32 %v1768_v52 }
 0x54b   : > { %v1757_v53 = vpop.xlane.xlu1 %1756 }
 0x54c   : > { %v1765_v54 = vsub.f32 %v1729_v31, %v1757_v53  ;;  %v1751_v55 = vpop.xlane.xlu2 %1750 }
 0x54d   : > { %v1763_v56 = vsub.f32 %v1694_v32, %v1751_v55 }
 0x54e   : > { %v2614_v57 = vpop.eup %2613  ;;  %v1780_v58 = vmul.f32 1.442695, %v1765_v54 }
 0x54f   : > { %v2616_v59 = vpop.eup %2615  ;;  %v1776_v60 = vmul.f32 1.442695, %v1763_v56  ;;  %v1791_v61 = vsel %vm1736_vm5, %v2614_v57, 0.0 }
 0x550   : > { %2617 = vpow2.f32 %v1780_v58  ;;  %1792 = vadd.xlane.f32.xlu1 %v1791_v61  ;;  %v1785_v62 = vsel %vm1736_vm5, %v2616_v59, 0.0 }
 0x551   : > { %2619 = vpow2.f32 %v1776_v60  ;;  %1786 = vadd.xlane.f32.xlu2 %v1785_v62 }
 0x556   : > { %v2618_v63 = vpop.eup %2617 }
 0x557   : > { %v2620_v2 = vpop.eup %2619  ;;  %v1803_v3 = vsel %vm1736_vm5, %v2618_v63, 0.0 }
 0x558   : > { %1804 = vadd.xlane.f32.xlu1 %v1803_v3  ;;  %v1797_v4 = vsel %vm1736_vm5, %v2620_v2, 0.0  ;;  %v2148_v3 = vld [vmem:[%s3408_s16] sm:$0xff] }
 0x559   : > { %1798 = vadd.xlane.f32.xlu2 %v1797_v4 }
 0x5c0   : > { %v1880_v15 = vpop.f32.mrf.mxu3 }
 0x5c1   : > { %v1848_v23 = vpop.f32.mrf.mxu2 }
 0x5c2   : > { %v1944_v24 = vpop.f32.mrf.mxu0 }
 0x5c3   : > { %v1793_v9 = vpop.xlane.xlu1 %1792  ;;  %v1912_v25 = vpop.f32.mrf.mxu1 }
 0x5c4   : > { %2621 = vrcp.f32 %v1793_v9  ;;  %v1787_v11 = vpop.xlane.xlu2 %1786 }
 0x5c5   : > { %2623 = vrcp.f32 %v1787_v11 }
 0x5ca   : > { %v2622_v12 = vpop.eup %2621 }
 0x5cb   : > { %v2624_v13 = vpop.eup %2623  ;;  %v1805_v14 = vpop.xlane.xlu1 %1804  ;;  %v1817_v17 = vmul.f32 %v2622_v12, %v2614_v57 }
 0x5cc   : > { %2625 = vrcp.f32 %v1805_v14  ;;  %v1799_v18 = vpop.xlane.xlu2 %1798  ;;  %v1815_v19 = vmul.f32 %v2624_v13, %v2616_v59 }
 0x5cd   : > { %2627 = vrcp.f32 %v1799_v18  ;;  %2518 = vmatmul.msk.f32.gmra.mxu3 %vm1732_vm4, %v1817_v17 }
 0x5ce   : > { %2515 = vmatmul.msk.f32.gmra.mxu2 %vm1732_vm4, %v1815_v19 }
 0x5d2   : > { %v2626_v20 = vpop.eup %2625 }
 0x5d3   : > { %v2628_v21 = vpop.eup %2627  ;;  %v1821_v16 = vmul.f32 %v2626_v20, %v2618_v63  ;;  %v2151_v63 = vld [vmem:[%s3408_s16 + $0x18] sm:$0xff] }
 0x5d4   : > { %v1819_v22 = vmul.f32 %v2628_v21, %v2620_v2  ;;  %2174 = vmatpush.msra.mxu2 %v2151_v63  ;;  %v2150_v2 = vld [vmem:[%s3408_s16 + $0x10] sm:$0xff]  ;;  %v2587_v21 = vld [vmem:[%s3406_s14] ss:$0 sm:$0xff] }
 0x5d5   : > { %2524 = vmatmul.msk.f32.gmra.mxu0 %vm1732_vm4, %v1821_v16  ;;  %2527 = vmatmul.msk.f32.vlgmr.msrb.gmra.mxu3 %vm1591_vm3, %v1880_v15 }
 0x5d6   : > { %2521 = vmatmul.msk.f32.gmra.mxu1 %vm1732_vm4, %v1819_v22  ;;  %2525 = vmatmul.msk.f32.vlgmr.msrb.gmra.mxu2 %vm1591_vm3, %v1848_v23  ;;  %v2588_v22 = vld [vmem:[%s3407_s15] ss:$0 sm:$0xff] }
 0x5d7   : > { %2175 = vmatpush.msra.mxu2 %v2150_v2 }
 0x5dd   : > { %2531 = vmatmul.msk.f32.vlgmr.msra.gmra.mxu0 %vm1591_vm3, %v1944_v24 }
 0x5de   : > { %2529 = vmatmul.msk.f32.vlgmr.msra.gmra.mxu1 %vm1591_vm3, %v1912_v25 }
 0x650   : > { %v1883_v26 = vpop.f32.mrf.mxu3 }
 0x651   : > { %v1851_v27 = vpop.f32.mrf.mxu2  ;;  %2528 = vmatmul.msk.f32.gmra.mxu3 %vm1591_vm3, %v1883_v26 }
 0x652   : > { %2526 = vmatmul.msk.f32.gmra.mxu2 %vm1591_vm3, %v1851_v27  ;;  %v1947_v28 = vpop.f32.mrf.mxu0 }
 0x653   : > { %v1915_v29 = vpop.f32.mrf.mxu1  ;;  %2532 = vmatmul.msk.f32.gmra.mxu0 %vm1591_vm3, %v1947_v28 }
 0x654   : > { %2530 = vmatmul.msk.f32.gmra.mxu1 %vm1591_vm3, %v1915_v29  ;;  %vm2277_vm3 = vcmask 523264  }
 0x658   : > { %v2006_v30 = vpop.f32.mrf.mxu3 }
 0x659   : > { %v1977_v31 = vpop.f32.mrf.mxu2  ;;  %v2071_v32 = vsel %vm1198_vm11, %v2006_v30, 0.0 }
 0x65a   : > { %v2070_v33 = vsel %vm1198_vm11, %v1977_v31, 0.0  ;;  %v2064_v36 = vpop.f32.mrf.mxu0 }
 0x65b   : > { %v2072_v34 = vadd.f32 %v2071_v32, %v2070_v33  ;;  %v2035_v35 = vpop.f32.mrf.mxu1  ;;  %v2075_v39 = vsel %vm1198_vm11, %v2064_v36, 0.0 }
 0x65c   : > { %v2073_v37 = vsel %vm1198_vm11, %v2035_v35, 0.0 }
 0x65d   : > { %v2074_v38 = vadd.f32 %v2073_v37, %v2072_v34 }
 0x65f   : > { %v2076_v40 = vadd.f32 %v2075_v39, %v2074_v38  ;;  %v3300_v38 = vld [vmem:[%s3409_s17] ss:$0 sm:$0xff] }
 0x661   : > { %v2084_v42 = vadd.f32 %v2076_v40, %v2988_v1 }
 0x663   : > { %v3260_v43 = vadd.f32 %v2586_v41, %v2084_v42 }
 0x665   : > { %v2094_v44 = vsel %vm1198_vm11, %v3260_v43, 0.0 }
 0x666   : > { %2095 = vadd.xlane.f32.xlu2 %v2094_v44 }
 0x6d0   : > { %v2067_v50 = vpop.f32.mrf.mxu0 }
 0x6d1   : > { %v2038_v46 = vpop.f32.mrf.mxu1  ;;  %v2082_v1 = vsel %vm1202_vm10, %v2067_v50, 0.0 }
 0x6d2   : > { %v2080_v52 = vsel %vm1202_vm10, %v2038_v46, 0.0  ;;  %v2272_v46 = vld [vmem:[%s3410_s18 + $0x38] sm:$0xff] }
 0x6d3   : > { %2292 = vmatpush.msra.mxu3 %v2272_v46 }
 0x6d4   : > { %v2009_v45 = vpop.f32.mrf.mxu3 }
 0x6d5   : > { %v1980_v47 = vpop.f32.mrf.mxu2  ;;  %v2078_v48 = vsel %vm1202_vm10, %v2009_v45, 0.0 }
 0x6d6   : > { %v2077_v49 = vsel %vm1202_vm10, %v1980_v47, 0.0  ;;  %v2271_v47 = vld [vmem:[%s3410_s18 + $0x30] sm:$0xff] }
 0x6d7   : > { %v2079_v51 = vadd.f32 %v2078_v48, %v2077_v49  ;;  %2293 = vmatpush.msra.mxu3 %v2271_v47  ;;  %v2270_v48 = vld [vmem:[%s3410_s18 + $0x28] sm:$0xff]  ;;  %v2269_v49 = vld [vmem:[%s3410_s18 + $0x20] sm:$0xff] }
 0x6d9   : > { %v2081_v53 = vadd.f32 %v2080_v52, %v2079_v51  ;;  %v2096_v54 = vpop.xlane.xlu2 %2095  ;;  %2294 = vmatpush.msra.mxu3 %v2270_v48  ;;  %v2268_v51 = vld [vmem:[%s3410_s18 + $0x18] sm:$0xff] }
 0x6da   : > { %v2100_v55 = vmul.f32 %v2096_v54, %v2994_v10 }
 0x6db   : > { %v2083_v56 = vadd.f32 %v2082_v1, %v2081_v53  ;;  %2295 = vmatpush.msra.mxu3 %v2269_v49  ;;  %v2267_v53 = vld [vmem:[%s3410_s18 + $0x10] sm:$0xff] }
 0x6dc   : > { %v2102_v57 = vsub.f32 %v3260_v43, %v2100_v55  ;;  %v2266_v55 = vld [vmem:[%s3410_s18 + $0x8] sm:$0xff] }
 0x6dd   : > { %v2085_v58 = vadd.f32 %v2083_v56, %v2986_v0  ;;  %v2149_v0 = vld [vmem:[%s3408_s16 + $0x8] sm:$0xff]  ;;  %2296 = vmatpush.msra.mxu3 %v2268_v51 }
 0x6de   : > { %v2104_v59 = vmul.f32 %v2102_v57, %v2102_v57  ;;  %2176 = vmatpush.msra.mxu2 %v2149_v0 }
 0x6df   : > { %v2091_v60 = vadd.f32 %v2586_v41, %v2085_v58  ;;  %2297 = vmatpush.msra.mxu3 %v2267_v53  ;;  %v2265_v58 = vld [vmem:[%s3410_s18] sm:$0xff] }
 0x6e0   : > { %v2106_v61 = vsel %vm1198_vm11, %v2104_v59, 0.0  ;;  %2177 = vmatpush.msra.mxu2 %v2148_v3 }
 0x6e1   : > { %2107 = vadd.xlane.f32.xlu1 %v2106_v61  ;;  %v2097_v62 = vsel %vm1202_vm10, %v2091_v60, 0.0  ;;  %2298 = vmatpush.msra.mxu3 %v2266_v55 }
 0x6e2   : > { %2098 = vadd.xlane.f32.xlu2 %v2097_v62 }
 0x6e3   : > { %2299 = vmatpush.msra.mxu3 %v2265_v58  ;;  %v2590_v58 = vld [vmem:[%s3411_s19] ss:$0 sm:$0xff] }
 0x754   : > { %v2108_v4 = vpop.xlane.xlu1 %2107 }
 0x755   : > { %v2112_v5 = vmul.f32 %v2108_v4, %v2994_v10  ;;  %v2099_v6 = vpop.xlane.xlu2 %2098 }
 0x756   : > { %v2101_v7 = vmul.f32 %v2099_v6, %v2994_v10 }
 0x757   : > { %v2114_v8 = vadd.f32 1e-05, %v2112_v5 }
 0x758   : > { %v2103_v9 = vsub.f32 %v2091_v60, %v2101_v7 }
 0x759   : > { %2629 = vrsqrt.f32 %v2114_v8  ;;  %vm2122_vm7 = vweird.f32 %v2114_v8 }
 0x75a   : > { %v2105_v11 = vmul.f32 %v2103_v9, %v2103_v9 }
 0x75c   : > { %v2109_v12 = vsel %vm1202_vm10, %v2105_v11, 0.0 }
 0x75d   : > { %2110 = vadd.xlane.f32.xlu1 %v2109_v12 }
 0x75f   : > { %v2630_v13 = vpop.eup %2629 }
 0x760   : > { %v2117_v14 = vmul.f32 %v2630_v13, %v2114_v8  ;;  %vm2123_vm6 = vweird.f32 %v2630_v13 }
 0x761   : > { %vm2124_vm8 = vmor %vm2122_vm7, %vm2123_vm6 }
 0x762   : > { %v2118_v17 = vmul.f32 %v2630_v13, %v2117_v14 }
 0x764   : > { %v2119_v18 = vmul.f32 0.5, %v2118_v17 }
 0x766   : > { %v2120_v19 = vsub.f32 1.5, %v2119_v18  ;;  %v2708_v18 = vmov -1.0  }
 0x768   : > { %v2121_v20 = vmul.f32 %v2630_v13, %v2120_v19 }
 0x76a   : > { %v2125_v16 = vsel %vm2124_vm8, %v2630_v13, %v2121_v20 }
 0x76b   : > { %v2136_v15 = vmul.f32 %v2125_v16, %v2102_v57 }
 0x76d   : > { %v2141_v23 = vmul.f32 %v2587_v21, %v2136_v15 }
 0x76f   : > { %v2146_v24 = vadd.f32 %v2588_v22, %v2141_v23 }
 0x771   : > { %2533 = vmatmul.msk.f32.vlgmr.msra.gmra.mxu2 %vm1198_vm11, %v2146_v24 }
 0x7d0   : > { %v2111_v25 = vpop.xlane.xlu1 %2110 }
 0x7d1   : > { %v2113_v26 = vmul.f32 %v2111_v25, %v2994_v10 }
 0x7d3   : > { %v2115_v27 = vadd.f32 1e-05, %v2113_v26 }
 0x7d5   : > { %2631 = vrsqrt.f32 %v2115_v27  ;;  %vm2132_vm12 = vweird.f32 %v2115_v27 }
 0x7db   : > { %v2632_v28 = vpop.eup %2631 }
 0x7dc   : > { %v2127_v29 = vmul.f32 %v2632_v28, %v2115_v27  ;;  %vm2133_vm9 = vweird.f32 %v2632_v28 }
 0x7dd   : > { %vm2134_vm13 = vmor %vm2132_vm12, %vm2133_vm9 }
 0x7de   : > { %v2128_v30 = vmul.f32 %v2632_v28, %v2127_v29 }
 0x7e0   : > { %v2129_v31 = vmul.f32 0.5, %v2128_v30 }
 0x7e2   : > { %v2130_v32 = vsub.f32 1.5, %v2129_v31 }
 0x7e4   : > { %v2131_v33 = vmul.f32 %v2632_v28, %v2130_v32 }
 0x7e6   : > { %v2135_v34 = vsel %vm2134_vm13, %v2632_v28, %v2131_v33  ;;  %vm2361_vm13 = vcmask 73728  }
 0x7e7   : > { %v2137_v35 = vmul.f32 %v2135_v34, %v2103_v9 }
 0x7e9   : > { %v2142_v36 = vmul.f32 %v2587_v21, %v2137_v35 }
 0x7eb   : > { %v2147_v37 = vadd.f32 %v2588_v22, %v2142_v36 }
 0x7ed   : > { %2534 = vmatmul.msk.f32.gmra.mxu2 %vm1198_vm11, %v2147_v37 }
 0x7f4   : > { %v2179_v39 = vpop.f32.mrf.mxu2 }
 0x7f5   : > { %v2180_v40 = vadd.f32 %v3300_v38, %v2179_v39 }
 0x7f7   : > { %v2187_v41 = vmul.f32 0.70710677, %v2180_v40  ;;  %v2185_v21 = vmul.f32 0.5, %v2180_v40 }
 0x7f9   : > { %v2193_v42 = vand.u32 2147483647, %v2187_v41  ;;  %vm2189_vm2 = vcmp.ge.f32.partialorder %v2187_v41, 0.0 }
 0x7fa   : > { %v2191_v19 = vsel %vm2189_vm2, 1.0, %v2708_v18 }
 0x7fb   : > { %v2195_v44 = vmul.f32 0.3275911, %v2193_v42  ;;  %v2247_v63 = vsub.f32 0.0, %v2193_v42 }
 0x7fd   : > { %v2197_v45 = vadd.f32 1.0, %v2195_v44  ;;  %v2249_v3 = vmul.f32 %v2247_v63, %v2193_v42 }
 0x7ff   : > { %2633 = vrcp.f32 %v2197_v45  ;;  %v2210_v1 = vand.u32 2147483648, %v2197_v45  ;;  %v2208_v57 = vand.u32 2147483647, %v2197_v45  ;;  %vm2204_vm15 = vweird.f32 %v2197_v45 }
 0x800   : > { %v2251_v6 = vmul.f32 1.442695, %v2249_v3 }
 0x801   : > { %v2211_v60 = vor.u32 1.1754944e-38, %v2210_v1  ;;  %vm2209_vm1 = vcmp.eq.f32.partialorder %v2208_v57, 8.507059e+37 }
 0x802   : > { %2635 = vpow2.f32 %v2251_v6  ;;  %v2336_v6 = vld [vmem:[%s3414_s22 + $0x18] sm:$0xff] }
 0x803   : > { %2353 = vmatpush.msrb.mxu1 %v2336_v6 }
 0x805   : > { %v2634_v50 = vpop.eup %2633 }
 0x806   : > { %v2200_v52 = vmul.f32 %v2634_v50, %v2197_v45  ;;  %vm2205_vm14 = vweird.f32 %v2634_v50 }
 0x807   : > { %vm2206_vm0 = vmor %vm2204_vm15, %vm2205_vm14 }
 0x808   : > { %v2201_v54 = vsub.f32 1.0, %v2200_v52  ;;  %v2636_v13 = vpop.eup %2635 }
 0x80a   : > { %v2202_v56 = vmul.f32 %v2634_v50, %v2201_v54 }
 0x80c   : > { %v2203_v59 = vadd.f32 %v2634_v50, %v2202_v56 }
 0x80e   : > { %v2207_v61 = vsel %vm2206_vm0, %v2634_v50, %v2203_v59 }
 0x80f   : > { %v2212_v62 = vsel %vm2209_vm1, %v2211_v60, %v2207_v61 }
 0x810   : > { %v2229_v2 = vmul.f32 1.0614054, %v2212_v62 }
 0x812   : > { %v2231_v0 = vadd.f32 -1.4531521, %v2229_v2 }
 0x814   : > { %v2233_v4 = vmul.f32 %v2231_v0, %v2212_v62 }
 0x816   : > { %v2235_v5 = vadd.f32 1.4214138, %v2233_v4 }
 0x818   : > { %v2237_v7 = vmul.f32 %v2235_v5, %v2212_v62 }
 0x81a   : > { %v2239_v8 = vadd.f32 -0.28449672, %v2237_v7  ;;  %v2334_v7 = vld [vmem:[%s3414_s22 + $0x8] sm:$0xff] }
 0x81c   : > { %v2241_v9 = vmul.f32 %v2239_v8, %v2212_v62  ;;  %v2333_v8 = vld [vmem:[%s3414_s22] sm:$0xff] }
 0x81e   : > { %v2243_v11 = vadd.f32 0.2548296, %v2241_v9 }
 0x820   : > { %v2245_v12 = vmul.f32 %v2243_v11, %v2212_v62 }
 0x822   : > { %v2255_v14 = vmul.f32 %v2636_v13, %v2245_v12 }
 0x824   : > { %v2257_v17 = vsub.f32 1.0, %v2255_v14 }
 0x826   : > { %v2259_v20 = vmul.f32 %v2257_v17, %v2191_v19 }
 0x828   : > { %v2261_v16 = vadd.f32 1.0, %v2259_v20 }
 0x82a   : > { %v2263_v15 = vmul.f32 %v2261_v16, %v2185_v21  ;;  %v2307_v21 = vld [vmem:[%s3412_s20] sm:$0x1] }
 0x82c   : > { %2535 = vmatmul.msk.f32.vlgmr.msra.gmra.mxu3 %vm2277_vm3, %v2263_v15 }
 0x870   : > { %v2182_v22 = vpop.f32.mrf.mxu2 }
 0x871   : > { %v2183_v23 = vadd.f32 %v3300_v38, %v2182_v22 }
 0x873   : > { %v2188_v24 = vmul.f32 0.70710677, %v2183_v23  ;;  %v2186_v55 = vmul.f32 0.5, %v2183_v23 }
 0x875   : > { %v2194_v25 = vand.u32 2147483647, %v2188_v24  ;;  %vm2190_vm8 = vcmp.ge.f32.partialorder %v2188_v24, 0.0  ;;  %v2337_v24 = vld [vmem:[%s3415_s23] sm:$0x1] }
 0x876   : > { %v2192_v54 = vsel %vm2190_vm8, 1.0, %v2708_v18 }
 0x877   : > { %v2196_v26 = vmul.f32 0.3275911, %v2194_v25  ;;  %v2248_v37 = vsub.f32 0.0, %v2194_v25 }
 0x879   : > { %v2198_v27 = vadd.f32 1.0, %v2196_v26  ;;  %v2250_v41 = vmul.f32 %v2248_v37, %v2194_v25 }
 0x87b   : > { %2637 = vrcp.f32 %v2198_v27  ;;  %v2225_v31 = vand.u32 2147483648, %v2198_v27  ;;  %v2223_v33 = vand.u32 2147483647, %v2198_v27  ;;  %vm2219_vm5 = vweird.f32 %v2198_v27 }
 0x87c   : > { %v2253_v45 = vmul.f32 1.442695, %v2250_v41 }
 0x87d   : > { %v2226_v35 = vor.u32 1.1754944e-38, %v2225_v31  ;;  %vm2224_vm7 = vcmp.eq.f32.partialorder %v2223_v33, 8.507059e+37 }
 0x87e   : > { %2639 = vpow2.f32 %v2253_v45 }
 0x881   : > { %v2638_v28 = vpop.eup %2637 }
 0x882   : > { %v2215_v29 = vmul.f32 %v2638_v28, %v2198_v27  ;;  %vm2220_vm4 = vweird.f32 %v2638_v28 }
 0x883   : > { %vm2221_vm6 = vmor %vm2219_vm5, %vm2220_vm4 }
 0x884   : > { %v2216_v30 = vsub.f32 1.0, %v2215_v29  ;;  %v2640_v51 = vpop.eup %2639 }
 0x886   : > { %v2217_v32 = vmul.f32 %v2638_v28, %v2216_v30 }
 0x888   : > { %v2218_v34 = vadd.f32 %v2638_v28, %v2217_v32 }
 0x88a   : > { %v2222_v36 = vsel %vm2221_vm6, %v2638_v28, %v2218_v34 }
 0x88b   : > { %v2227_v38 = vsel %vm2224_vm7, %v2226_v35, %v2222_v36 }
 0x88c   : > { %v2230_v39 = vmul.f32 1.0614054, %v2227_v38 }
 0x88e   : > { %v2232_v40 = vadd.f32 -1.4531521, %v2230_v39 }
 0x890   : > { %v2234_v42 = vmul.f32 %v2232_v40, %v2227_v38 }
 0x892   : > { %v2236_v44 = vadd.f32 1.4214138, %v2234_v42 }
 0x894   : > { %v2238_v46 = vmul.f32 %v2236_v44, %v2227_v38 }
 0x896   : > { %v2240_v47 = vadd.f32 -0.28449672, %v2238_v46 }
 0x898   : > { %v2242_v48 = vmul.f32 %v2240_v47, %v2227_v38 }
 0x89a   : > { %v2244_v49 = vadd.f32 0.2548296, %v2242_v48 }
 0x89c   : > { %v2246_v50 = vmul.f32 %v2244_v49, %v2227_v38 }
 0x89e   : > { %v2256_v52 = vmul.f32 %v2640_v51, %v2246_v50 }
 0x8a0   : > { %v2258_v53 = vsub.f32 1.0, %v2256_v52 }
 0x8a2   : > { %v2260_v1 = vmul.f32 %v2258_v53, %v2192_v54 }
 0x8a4   : > { %v2262_v56 = vadd.f32 1.0, %v2260_v1 }
 0x8a6   : > { %v2264_v57 = vmul.f32 %v2262_v56, %v2186_v55 }
 0x8a8   : > { %2536 = vmatmul.msk.f32.gmra.mxu3 %vm2277_vm3, %v2264_v57 }
 0x8af   : > { %v2301_v59 = vpop.f32.mrf.mxu3 }
 0x8b0   : > { %v2302_v60 = vadd.f32 %v2590_v58, %v2301_v59 }
 0x8b2   : > { %v2306_v61 = vadd.f32 %v2302_v60, %v3260_v43  ;;  %v2335_v43 = vld [vmem:[%s3414_s22 + $0x10] sm:$0xff] }
 0x8b3   : > { %2354 = vmatpush.msrb.mxu1 %v2335_v43 }
 0x8b4   : > { %v2309_v62 = vsel %vm1202_vm10, %v2306_v61, 0.0 }
 0x8b5   : > { %2310 = vadd.xlane.f32.xlu2 %v2309_v62  ;;  %2355 = vmatpush.msrb.mxu1 %v2334_v7 }
 0x8b7   : > { %2356 = vmatpush.msrb.mxu1 %v2333_v8 }
 0x928   : > { %v2311_v63 = vpop.xlane.xlu2 %2310 }
 0x929   : > { %v2312_v2 = vmul.f32 %v2311_v63, %v2994_v10 }
 0x92b   : > { %v2313_v0 = vsub.f32 %v2306_v61, %v2312_v2  ;;  %v2304_v3 = vpop.f32.mrf.mxu3 }
 0x92d   : > { %v2314_v4 = vmul.f32 %v2313_v0, %v2313_v0 }
 0x92f   : > { %v2315_v5 = vsel %vm1202_vm10, %v2314_v4, 0.0 }
 0x930   : > { %2316 = vadd.xlane.f32.xlu1 %v2315_v5 }
 0x9a3   : > { %v2317_v9 = vpop.xlane.xlu1 %2316 }
 0x9a4   : > { %v2318_v11 = vmul.f32 %v2317_v9, %v2994_v10  ;;  %v2308_v10 = vld [vmem:[%s3413_s21] sm:$0x1] }
 0x9a6   : > { %v2319_v12 = vadd.f32 1e-05, %v2318_v11 }
 0x9a8   : > { %2641 = vrsqrt.f32 %v2319_v12  ;;  %vm2326_vm9 = vweird.f32 %v2319_v12 }
 0x9ae   : > { %v2642_v13 = vpop.eup %2641 }
 0x9af   : > { %v2321_v14 = vmul.f32 %v2642_v13, %v2319_v12  ;;  %vm2327_vm10 = vweird.f32 %v2642_v13 }
 0x9b0   : > { %vm2328_vm12 = vmor %vm2326_vm9, %vm2327_vm10 }
 0x9b1   : > { %v2322_v17 = vmul.f32 %v2642_v13, %v2321_v14 }
 0x9b3   : > { %v2323_v18 = vmul.f32 0.5, %v2322_v17 }
 0x9b5   : > { %v2324_v19 = vsub.f32 1.5, %v2323_v18 }
 0x9b7   : > { %v2325_v20 = vmul.f32 %v2642_v13, %v2324_v19 }
 0x9b9   : > { %v2329_v16 = vsel %vm2328_vm12, %v2642_v13, %v2325_v20 }
 0x9ba   : > { %v2330_v15 = vmul.f32 %v2329_v16, %v2313_v0 }
 0x9bc   : > { %v2331_v22 = vmul.f32 %v2330_v15, %v2307_v21 }
 0x9be   : > { %v2332_v23 = vadd.f32 %v2331_v22, %v2308_v10 }
 0x9c0   : > { %2537 = vmatmul.msk.f32.vlgmr.msrb.gmra.mxu1 %vm1198_vm11, %v2332_v23 }
 0xa3d   : > { %v2358_v25 = vpop.f32.mrf.mxu1 }
 0xa3e   : > { %v2359_v26 = vadd.f32 %v2358_v25, %v2337_v24 }
 0xa40   : > { %2362 = vst.msk [vmem:[%s729_s0] sm:$0x1] %vm2361_vm13, %v2359_v26 }
 0xa41   : > { %2670 = shalt.err (!%p2667_p3)
}
 0xa42   : > { %2541 = dma.vmem_to_hbm [thread:$0]  (%p2872_p5), %s2375_s5, 16, %s2377_s4, %s2364_s27  }
 0xa43 PF: > { %s3458_s8 = sld [smem:[#allocation7_spill]] }
 0xa44   : > { %s3459_s30 = sld [smem:[#allocation5_spill]] }
 0xa49   : > { %p2547_p4 = scmp.ge.s32.totalorder %s3458_s8, 2 }
 0xa4a   : > { %s2388_s9 = sand.u32 1, %s3459_s30  }
 0xa4b   : > { %p2544_p7 = pnand %p2547_p4, %p2876_p6  ;;  %s2389_s6 = scalar_lea.sflag [#allocation3], %s2388_s9 }
 0xa4d   : > { %p2545_p8 = pneg %p2544_p7 }
 0xa4f   : > { %2688 = dma.done.wait (%p2545_p8), %s2389_s6, 16  }
 0xa50   : > { %2690 = vsyncadd (%p2545_p8), %s2389_s6, 4294967280  ;;  %s3461_s28 = sld [smem:[#allocation8_spill]]  ;;  %s3464_s5 = smov %s2697_s26 }
 0xa51   : > { %s3462_s7 = sld [smem:[#allocation6_spill]] }
 0xa52   : > { %s3463_s27 = sld [smem:[#allocation9_spill]] }
 0xa56   : > { %p34_p9 = scmp.ge.s32.totalorder %s3461_s28, 4  }
 0xa57   : > { %s3465_s26 = smov %s3462_s7 }
 0xa58   :  { %36 = sbr.rel (!%p34_p9) target bundleno = 14 (0xe), region = 159 }
 0xa5d   :  { %2394 = vsyncpa [#allocation3], 1 }
 0xa5e   :  { %2396 = vsyncpa [#allocation3 + $0x1], 1 }

</bundles_post_ra>
